<compile_context>
chip_gen: v7x
topology: tpu7x:2x2x1
jax: 0.10.0
libtpu: 0.0.40
codegen_flags: <defaults>
</compile_context>

<pallas_src>
import functools

import jax
import jax.numpy as jnp
from jax.experimental import pallas as pl
from jax.experimental.pallas import tpu as pltpu


# ---------------------------------------------------------------------------
# Kernels
# ---------------------------------------------------------------------------
def _layer1_fused_kernel(a_ref, x_ref, w1_ref, b1_ref, w2_ref, o_ref, acc_ref,
                         *, tk):
    """Row tile i: HW[i] = relu( sum_k A[i,k] @ (X[k] @ W1) + b1 ) @ W2.

    K-tiled over nodes with an f32 VMEM accumulator.  `x_ref` is either the
    streamed K tile (tk, F) or the full VMEM-resident (N, F) array (sliced
    here by K step).
    """
    k = pl.program_id(1)

    @pl.when(k == 0)
    def _():
        acc_ref[...] = jnp.zeros_like(acc_ref)

    if x_ref.shape[0] == tk:            # streamed K tile
        x_k = x_ref[...]
    else:                               # VMEM-resident full X
        off = pl.multiple_of(k * tk, tk)
        x_k = x_ref[pl.ds(off, tk), :]

    # Fused X@W1 recompute per (i, k) step; hides under the A HBM stream.
    xw = jnp.dot(x_k, w1_ref[...], preferred_element_type=jnp.float32)
    acc_ref[...] += jnp.dot(
        a_ref[...], xw.astype(a_ref.dtype), preferred_element_type=jnp.float32
    )

    @pl.when(k == pl.num_programs(1) - 1)
    def _():
        h = jnp.maximum(acc_ref[...] + b1_ref[...], 0.0)
        # F.dropout(training=self.training): identity in eval mode.
        # Padded rows (i >= n) produce relu(b1) @ W2 garbage; harmless since
        # the matching A_hat columns in stage 3 are zero and output is sliced.
        o_ref[...] = jnp.dot(
            h.astype(w2_ref.dtype), w2_ref[...],
            preferred_element_type=jnp.float32,
        ).astype(o_ref.dtype)


def _layer2_kernel(a_ref, hw_ref, b2_ref, o_ref, acc_ref, *, tk, num_classes):
    """Row tile i: log_softmax( sum_k A[i,k] @ HW[k] + b2 ), K-tiled."""
    k = pl.program_id(1)

    @pl.when(k == 0)
    def _():
        acc_ref[...] = jnp.zeros_like(acc_ref)

    if hw_ref.shape[0] == tk:           # streamed K tile
        hw_k = hw_ref[...]
    else:                               # VMEM-resident full HW
        off = pl.multiple_of(k * tk, tk)
        hw_k = hw_ref[pl.ds(off, tk), :]

    acc_ref[...] += jnp.dot(
        a_ref[...], hw_k, preferred_element_type=jnp.float32
    )

    @pl.when(k == pl.num_programs(1) - 1)
    def _():
        z = acc_ref[...] + b2_ref[...]
        # padded class lanes must not contribute to the normalizer
        lane = jax.lax.broadcasted_iota(jnp.int32, z.shape, 1)
        z = jnp.where(lane < num_classes, z, -1e30)
        m = jnp.max(z, axis=-1, keepdims=True)
        s = z - m
        lse = jnp.log(jnp.sum(jnp.exp(s), axis=-1, keepdims=True))
        o_ref[...] = (s - lse).astype(o_ref.dtype)


# ---------------------------------------------------------------------------
# Wrapper
# ---------------------------------------------------------------------------
def _round_up(x, m):
    return (x + m - 1) // m * m


def _vmem_limit_bytes():
    """Generation-aware scoped-VMEM limit (96 MiB on 128-MiB chips, 48 MiB on
    64-MiB v7x), with a conservative fallback."""
    cap = 64 * 1024 * 1024
    try:
        cap = int(pltpu.get_tpu_info().vmem_capacity_bytes)
    except Exception:
        pass
    return max(32 * 1024 * 1024, min(cap * 3 // 4, 100 * 1024 * 1024))


def gcn_forward(a_hat, x, w1, b1, w2, b2, *, tm=512, tk=1024):
    n, f = x.shape
    h = w1.shape[1]
    c = w2.shape[1]

    fp = _round_up(f, 128)
    hp = _round_up(h, 128)
    cp = _round_up(c, 128)

    # Padding decoupled from tk: pad N to the row-tile granularity only.
    base = 256 if n <= 256 else 512
    np_ = _round_up(n, base)

    vmem_limit = _vmem_limit_bytes()
    budget = int(vmem_limit * 0.8)

    # Pick the largest power-of-two tiles (<= request) that divide np_.
    def _pick(req):
        t = 256
        while t * 2 <= req and t * 2 <= np_ and np_ % (t * 2) == 0:
            t *= 2
        return min(t, np_)

    tm = _pick(tm)
    tk = _pick(tk)
    # Keep nm >= 2 when possible so the 'parallel' row axis feeds both v7x TCs.
    while np_ // tm < 2 and tm > 256:
        tm //= 2

    # Hold the dense right operands resident in VMEM when they comfortably fit.
    x_resident = np_ * fp * 2 <= budget // 4
    hw_resident = np_ * cp * 2 <= budget // 4

    def _working_set(tm_, tk_):
        a_db = 2 * tm_ * tk_ * 2
        x_bytes = np_ * fp * 2 if x_resident else 2 * tk_ * fp * 2
        w_bytes = 2 * (fp * hp + hp * cp) * 2
        s2 = a_db + x_bytes + w_bytes + tm_ * hp * 4 + 2 * tm_ * cp * 2
        hw_bytes = np_ * cp * 2 if hw_resident else 2 * tk_ * cp * 2
        s3 = a_db + hw_bytes + tm_ * cp * 4 + 2 * tm_ * cp * 4
        return max(s2, s3)

    while _working_set(tm, tk) > budget and tk > 256:
        tk //= 2
    while _working_set(tm, tk) > budget and tm > 256:
        tm //= 2
    if _working_set(tm, tk) > budget:
        x_resident = hw_resident = False

    nm = np_ // tm
    nk = np_ // tk

    # Zero-pad to lane/MXU friendly shapes; padding is mathematically inert.
    # A_hat in bf16 (MXU operand, halves HBM traffic vs f32); f32 epilogue.
    a_p = jnp.zeros((np_, np_), jnp.bfloat16).at[:n, :n].set(a_hat.astype(jnp.bfloat16))
    x_p = jnp.zeros((np_, fp), jnp.bfloat16).at[:n, :f].set(x.astype(jnp.bfloat16))
    w1_p = jnp.zeros((fp, hp), jnp.bfloat16).at[:f, :h].set(w1.astype(jnp.bfloat16))
    w2_p = jnp.zeros((hp, cp), jnp.bfloat16).at[:h, :c].set(w2.astype(jnp.bfloat16))
    b1_p = jnp.zeros((1, hp), jnp.float32).at[0, :h].set(b1.astype(jnp.float32))
    b2_p = jnp.zeros((1, cp), jnp.float32).at[0, :c].set(b2.astype(jnp.float32))

    cparams = pltpu.CompilerParams(
        dimension_semantics=("parallel", "arbitrary"),
        vmem_limit_bytes=vmem_limit,
    )

    # --- stage 1+2 fused: HW = relu(A @ (X @ W1) + b1) @ W2 -----------------
    x_spec = (pl.BlockSpec((np_, fp), lambda i, k: (0, 0)) if x_resident
              else pl.BlockSpec((tk, fp), lambda i, k: (k, 0)))
    hw = pl.pallas_call(
        functools.partial(_layer1_fused_kernel, tk=tk),
        out_shape=jax.ShapeDtypeStruct((np_, cp), jnp.bfloat16),
        grid_spec=pltpu.PrefetchScalarGridSpec(
            num_scalar_prefetch=0,
            grid=(nm, nk),
            in_specs=[
                pl.BlockSpec((tm, tk), lambda i, k: (i, k)),   # A_hat row/K tile
                x_spec,                                        # X (resident / K tile)
                pl.BlockSpec((fp, hp), lambda i, k: (0, 0)),   # W1 (resident)
                pl.BlockSpec((1, hp), lambda i, k: (0, 0)),    # b1
                pl.BlockSpec((hp, cp), lambda i, k: (0, 0)),   # W2 (resident)
            ],
            out_specs=pl.BlockSpec((tm, cp), lambda i, k: (i, 0)),
            scratch_shapes=[pltpu.VMEM((tm, hp), jnp.float32)],
        ),
        compiler_params=cparams,
        cost_estimate=pl.CostEstimate(
            flops=2 * nm * np_ * fp * hp + 2 * np_ * np_ * hp + 2 * np_ * hp * cp,
            transcendentals=0,
            bytes_accessed=(np_ * np_ * 2
                            + (np_ * fp * 2 if x_resident else nm * np_ * fp * 2)
                            + (fp * hp + hp * cp) * 2
                            + hp * 4
                            + np_ * cp * 2),
        ),
    )(a_p, x_p, w1_p, b1_p, w2_p)

    # --- stage 3: out = log_softmax(A @ HW + b2) -----------------------------
    hw_spec = (pl.BlockSpec((np_, cp), lambda i, k: (0, 0)) if hw_resident
               else pl.BlockSpec((tk, cp), lambda i, k: (k, 0)))
    out = pl.pallas_call(
        functools.partial(_layer2_kernel, tk=tk, num_classes=c),
        out_shape=jax.ShapeDtypeStruct((np_, cp), jnp.float32),
        grid_spec=pltpu.PrefetchScalarGridSpec(
            num_scalar_prefetch=0,
            grid=(nm, nk),
            in_specs=[
                pl.BlockSpec((tm, tk), lambda i, k: (i, k)),   # A_hat row/K tile
                hw_spec,                                       # HW (resident / K tile)
                pl.BlockSpec((1, cp), lambda i, k: (0, 0)),    # b2
            ],
            out_specs=pl.BlockSpec((tm, cp), lambda i, k: (i, 0)),
            scratch_shapes=[pltpu.VMEM((tm, cp), jnp.float32)],
        ),
        compiler_params=cparams,
        cost_estimate=pl.CostEstimate(
            flops=2 * np_ * np_ * cp,
            transcendentals=np_ * cp,
            bytes_accessed=(np_ * np_ * 2
                            + (np_ * cp * 2 if hw_resident else nm * np_ * cp * 2)
                            + cp * 4
                            + np_ * cp * 4),
        ),
    )(a_p, hw, b2_p)

    return out[:n, :c]


# ---------------------------------------------------------------------------
# Graph normalization + init (plain JAX glue)
# ---------------------------------------------------------------------------
def gcn_norm_dense(edge_index, num_nodes):
    """Dense D^{-1/2}(A + I)D^{-1/2} with add_remaining_self_loops semantics:
    pre-existing self-loop edges are dropped and exactly one unit self-loop
    per node is added (matches PyG GCNConv gcn_norm for unweighted graphs)."""
    src = edge_index[0]
    dst = edge_index[1]
    w = jnp.where(src != dst, 1.0, 0.0).astype(jnp.float32)
    deg = jnp.zeros((num_nodes,), jnp.float32).at[dst].add(w) + 1.0
    dinv = jax.lax.rsqrt(deg)
    a_hat = jnp.zeros((num_nodes, num_nodes), jnp.float32)
    a_hat = a_hat.at[dst, src].add(w * dinv[dst] * dinv[src])
    a_hat = a_hat + jnp.diag(dinv * dinv)
    return a_hat


def glorot(key, shape):
    fan_in, fan_out = shape
    limit = jnp.sqrt(6.0 / (fan_in + fan_out))
    return jax.random.uniform(key, shape, jnp.float32, -limit, limit)


if __name__ == "__main__":
    # small, deterministic problem: N=64 nodes, feature=16, hidden=32, classes=8
    N, FEAT, HIDDEN, CLASSES, E = 64, 16, 32, 8, 256

    key = jax.random.PRNGKey(0)
    k_x, k_e_src, k_e_dst, k_w1, k_w2 = jax.random.split(key, 5)

    features = jax.random.normal(k_x, (N, FEAT), jnp.float32)
    edges = jnp.stack(
        [
            jax.random.randint(k_e_src, (E,), 0, N, jnp.int32),
            jax.random.randint(k_e_dst, (E,), 0, N, jnp.int32),
        ],
        axis=0,
    )  # [2, E]

    # deterministic parameter init (glorot weights, zero bias), as in GCNConv
    w1 = glorot(k_w1, (FEAT, HIDDEN))
    b1 = jnp.zeros((HIDDEN,), jnp.float32)
    w2 = glorot(k_w2, (HIDDEN, CLASSES))
    b2 = jnp.zeros((CLASSES,), jnp.float32)

    a_hat = gcn_norm_dense(edges, N)

    fwd = jax.jit(gcn_forward)
    out = jax.block_until_ready(fwd(a_hat, features, w1, b1, w2, b2))

    assert out.shape == (N, CLASSES)
    assert bool(jnp.all(jnp.isfinite(out)))
    # rows of log_softmax must exp-sum to 1
    assert bool(jnp.allclose(jnp.sum(jnp.exp(out), axis=1), 1.0, atol=1e-4))

    # f32 pure-JAX reference (kernel runs bf16 MXU operands -> loose tol)
    xw_r = features @ w1
    h_r = jnp.maximum(a_hat @ xw_r + b1, 0.0)
    z_r = a_hat @ (h_r @ w2) + b2
    ref = jax.nn.log_softmax(z_r, axis=1)
    assert bool(jnp.allclose(out, ref, atol=1e-1)), float(
        jnp.max(jnp.abs(out - ref))
    )

    print("KERNEL_OK")
</pallas_src>

<mosaic_0001>
module attributes {stable_mosaic.version = 11 : i64} {
  func.func @_layer1_fused_kernel(%arg0: i32, %arg1: i32, %arg2: memref<256x256xbf16, #tpu.memory_space<vmem>>, %arg3: memref<256x128xbf16, #tpu.memory_space<vmem>>, %arg4: memref<128x128xbf16, #tpu.memory_space<vmem>>, %arg5: memref<1x128xf32, #tpu.memory_space<vmem>>, %arg6: memref<128x128xbf16, #tpu.memory_space<vmem>>, %arg7: memref<256x128xbf16, #tpu.memory_space<vmem>>, %arg8: memref<256x128xf32, #tpu.memory_space<vmem>>) attributes {dimension_semantics = [#tpu.dimension_semantics<parallel>, #tpu.dimension_semantics<arbitrary>], iteration_bounds = array<i64: 1, 1>, scalar_prefetch = 0 : i64, scratch_operands = 1 : i64, tpu.core_type = #tpu.core_type<tc>, window_params = [{transform_indices = @transform_0, window_bounds = array<i64: 256, 256>}, {pipeline_mode = #tpu.pipeline_mode<synchronous>, transform_indices = @transform_1, window_bounds = array<i64: 256, 128>}, {pipeline_mode = #tpu.pipeline_mode<synchronous>, transform_indices = @transform_2, window_bounds = array<i64: 128, 128>}, {pipeline_mode = #tpu.pipeline_mode<synchronous>, transform_indices = @transform_3, window_bounds = array<i64: 1, 128>}, {pipeline_mode = #tpu.pipeline_mode<synchronous>, transform_indices = @transform_4, window_bounds = array<i64: 128, 128>}, {transform_indices = @transform_5, window_bounds = array<i64: 256, 128>}]} {
    %c0_i32 = arith.constant 0 : i32
    %0 = arith.cmpi eq, %arg1, %c0_i32 : i32
    %1 = arith.extui %0 : i1 to i32
    %c0_i32_0 = arith.constant 0 : i32
    %2 = arith.cmpi ne, %1, %c0_i32_0 : i32
    scf.if %2 {
      %cst_13 = arith.constant 0.000000e+00 : f32
      %15 = vector.broadcast %cst_13 : f32 to vector<256x128xf32>
      %c0_14 = arith.constant 0 : index
      %c0_15 = arith.constant 0 : index
      %16 = vector.load %arg8[%c0_14, %c0_15] : memref<256x128xf32, #tpu.memory_space<vmem>>, vector<256x128xf32>
      tpu.vector_store %arg8[%c0_14, %c0_15], %15 {strides = array<i32>} : memref<256x128xf32, #tpu.memory_space<vmem>>, vector<256x128xf32>,
    } else {
    }
    %c0 = arith.constant 0 : index
    %c0_1 = arith.constant 0 : index
    %3 = vector.load %arg3[%c0, %c0_1] : memref<256x128xbf16, #tpu.memory_space<vmem>>, vector<256x128xbf16>
    %c0_2 = arith.constant 0 : index
    %c0_3 = arith.constant 0 : index
    %4 = vector.load %arg4[%c0_2, %c0_3] : memref<128x128xbf16, #tpu.memory_space<vmem>>, vector<128x128xbf16>
    %cst = arith.constant dense<0.000000e+00> : vector<256x128xf32>
    %5 = tpu.matmul %3, %4, %cst {dimension_numbers = #tpu.dot_dimension_numbers<[1], [0], [0], [1], [0, 0, 1, 1], [], []>} : vector<256x128xbf16>, vector<128x128xbf16>, vector<256x128xf32> -> vector<256x128xf32>
    %c0_4 = arith.constant 0 : index
    %c0_5 = arith.constant 0 : index
    %6 = vector.load %arg8[%c0_4, %c0_5] : memref<256x128xf32, #tpu.memory_space<vmem>>, vector<256x128xf32>
    %c0_6 = arith.constant 0 : index
    %c0_7 = arith.constant 0 : index
    %7 = vector.load %arg2[%c0_6, %c0_7] : memref<256x256xbf16, #tpu.memory_space<vmem>>, vector<256x256xbf16>
    %8 = arith.truncf %5 : vector<256x128xf32> to vector<256x128xbf16>
    %cst_8 = arith.constant dense<0.000000e+00> : vector<256x128xf32>
    %9 = tpu.matmul %7, %8, %cst_8 {dimension_numbers = #tpu.dot_dimension_numbers<[1], [0], [0], [1], [0, 0, 1, 1], [], []>} : vector<256x256xbf16>, vector<256x128xbf16>, vector<256x128xf32> -> vector<256x128xf32>
    %10 = arith.addf %6, %9 : vector<256x128xf32>
    %c0_9 = arith.constant 0 : index
    %c0_10 = arith.constant 0 : index
    %11 = vector.load %arg8[%c0_9, %c0_10] : memref<256x128xf32, #tpu.memory_space<vmem>>, vector<256x128xf32>
    tpu.vector_store %arg8[%c0_9, %c0_10], %10 {strides = array<i32>} : memref<256x128xf32, #tpu.memory_space<vmem>>, vector<256x128xf32>,
    %c0_i32_11 = arith.constant 0 : i32
    %12 = arith.cmpi eq, %arg1, %c0_i32_11 : i32
    %13 = arith.extui %12 : i1 to i32
    %c0_i32_12 = arith.constant 0 : i32
    %14 = arith.cmpi ne, %13, %c0_i32_12 : i32
    scf.if %14 {
      %c0_13 = arith.constant 0 : index
      %c0_14 = arith.constant 0 : index
      %15 = vector.load %arg8[%c0_13, %c0_14] : memref<256x128xf32, #tpu.memory_space<vmem>>, vector<256x128xf32>
      %c0_15 = arith.constant 0 : index
      %c0_16 = arith.constant 0 : index
      %16 = vector.load %arg5[%c0_15, %c0_16] : memref<1x128xf32, #tpu.memory_space<vmem>>, vector<1x128xf32>
      %17 = vector.broadcast %16 : vector<1x128xf32> to vector<256x128xf32>
      %18 = arith.addf %15, %17 : vector<256x128xf32>
      %cst_17 = arith.constant 0.000000e+00 : f32
      %19 = vector.broadcast %cst_17 : f32 to vector<256x128xf32>
      %20 = arith.maximumf %18, %19 : vector<256x128xf32>
      %21 = arith.truncf %20 : vector<256x128xf32> to vector<256x128xbf16>
      %c0_18 = arith.constant 0 : index
      %c0_19 = arith.constant 0 : index
      %22 = vector.load %arg6[%c0_18, %c0_19] : memref<128x128xbf16, #tpu.memory_space<vmem>>, vector<128x128xbf16>
      %cst_20 = arith.constant dense<0.000000e+00> : vector<256x128xf32>
      %23 = tpu.matmul %21, %22, %cst_20 {dimension_numbers = #tpu.dot_dimension_numbers<[1], [0], [0], [1], [0, 0, 1, 1], [], []>} : vector<256x128xbf16>, vector<128x128xbf16>, vector<256x128xf32> -> vector<256x128xf32>
      %24 = arith.truncf %23 : vector<256x128xf32> to vector<256x128xbf16>
      %c0_21 = arith.constant 0 : index
      %c0_22 = arith.constant 0 : index
      %25 = vector.load %arg7[%c0_21, %c0_22] : memref<256x128xbf16, #tpu.memory_space<vmem>>, vector<256x128xbf16>
      tpu.vector_store %arg7[%c0_21, %c0_22], %24 {strides = array<i32>} : memref<256x128xbf16, #tpu.memory_space<vmem>>, vector<256x128xbf16>,
    } else {
    }
    return
  }
  func.func @transform_0(%arg0: i32, %arg1: i32) -> (i32, i32) {
    %c0_i32 = arith.constant 0 : i32
    return %arg0, %arg1 : i32, i32
  }
  func.func @transform_1(%arg0: i32, %arg1: i32) -> (i32, i32) {
    %c0_i32 = arith.constant 0 : i32
    %c0_i32_0 = arith.constant 0 : i32
    %c0_i32_1 = arith.constant 0 : i32
    return %c0_i32, %c0_i32_0 : i32, i32
  }
  func.func @transform_2(%arg0: i32, %arg1: i32) -> (i32, i32) {
    %c0_i32 = arith.constant 0 : i32
    %c0_i32_0 = arith.constant 0 : i32
    %c0_i32_1 = arith.constant 0 : i32
    return %c0_i32, %c0_i32_0 : i32, i32
  }
  func.func @transform_3(%arg0: i32, %arg1: i32) -> (i32, i32) {
    %c0_i32 = arith.constant 0 : i32
    %c0_i32_0 = arith.constant 0 : i32
    %c0_i32_1 = arith.constant 0 : i32
    return %c0_i32, %c0_i32_0 : i32, i32
  }
  func.func @transform_4(%arg0: i32, %arg1: i32) -> (i32, i32) {
    %c0_i32 = arith.constant 0 : i32
    %c0_i32_0 = arith.constant 0 : i32
    %c0_i32_1 = arith.constant 0 : i32
    return %c0_i32, %c0_i32_0 : i32, i32
  }
  func.func @transform_5(%arg0: i32, %arg1: i32) -> (i32, i32) {
    %c0_i32 = arith.constant 0 : i32
    %c0_i32_0 = arith.constant 0 : i32
    return %arg0, %c0_i32 : i32, i32
  }
}

module attributes {stable_mosaic.version = 11 : i64} {
  func.func @_layer2_kernel(%arg0: i32, %arg1: i32, %arg2: memref<256x256xbf16, #tpu.memory_space<vmem>>, %arg3: memref<256x128xbf16, #tpu.memory_space<vmem>>, %arg4: memref<1x128xf32, #tpu.memory_space<vmem>>, %arg5: memref<256x128xf32, #tpu.memory_space<vmem>>, %arg6: memref<256x128xf32, #tpu.memory_space<vmem>>) attributes {dimension_semantics = [#tpu.dimension_semantics<parallel>, #tpu.dimension_semantics<arbitrary>], iteration_bounds = array<i64: 1, 1>, scalar_prefetch = 0 : i64, scratch_operands = 1 : i64, tpu.core_type = #tpu.core_type<tc>, window_params = [{transform_indices = @transform_0, window_bounds = array<i64: 256, 256>}, {pipeline_mode = #tpu.pipeline_mode<synchronous>, transform_indices = @transform_1, window_bounds = array<i64: 256, 128>}, {pipeline_mode = #tpu.pipeline_mode<synchronous>, transform_indices = @transform_2, window_bounds = array<i64: 1, 128>}, {transform_indices = @transform_3, window_bounds = array<i64: 256, 128>}]} {
    %c0_i32 = arith.constant 0 : i32
    %0 = arith.cmpi eq, %arg1, %c0_i32 : i32
    %1 = arith.extui %0 : i1 to i32
    %c0_i32_0 = arith.constant 0 : i32
    %2 = arith.cmpi ne, %1, %c0_i32_0 : i32
    scf.if %2 {
      %cst_10 = arith.constant 0.000000e+00 : f32
      %12 = vector.broadcast %cst_10 : f32 to vector<256x128xf32>
      %c0_11 = arith.constant 0 : index
      %c0_12 = arith.constant 0 : index
      %13 = vector.load %arg6[%c0_11, %c0_12] : memref<256x128xf32, #tpu.memory_space<vmem>>, vector<256x128xf32>
      tpu.vector_store %arg6[%c0_11, %c0_12], %12 {strides = array<i32>} : memref<256x128xf32, #tpu.memory_space<vmem>>, vector<256x128xf32>,
    } else {
    }
    %c0 = arith.constant 0 : index
    %c0_1 = arith.constant 0 : index
    %3 = vector.load %arg3[%c0, %c0_1] : memref<256x128xbf16, #tpu.memory_space<vmem>>, vector<256x128xbf16>
    %c0_2 = arith.constant 0 : index
    %c0_3 = arith.constant 0 : index
    %4 = vector.load %arg6[%c0_2, %c0_3] : memref<256x128xf32, #tpu.memory_space<vmem>>, vector<256x128xf32>
    %c0_4 = arith.constant 0 : index
    %c0_5 = arith.constant 0 : index
    %5 = vector.load %arg2[%c0_4, %c0_5] : memref<256x256xbf16, #tpu.memory_space<vmem>>, vector<256x256xbf16>
    %cst = arith.constant dense<0.000000e+00> : vector<256x128xf32>
    %6 = tpu.matmul %5, %3, %cst {dimension_numbers = #tpu.dot_dimension_numbers<[1], [0], [0], [1], [0, 0, 1, 1], [], []>} : vector<256x256xbf16>, vector<256x128xbf16>, vector<256x128xf32> -> vector<256x128xf32>
    %7 = arith.addf %4, %6 : vector<256x128xf32>
    %c0_6 = arith.constant 0 : index
    %c0_7 = arith.constant 0 : index
    %8 = vector.load %arg6[%c0_6, %c0_7] : memref<256x128xf32, #tpu.memory_space<vmem>>, vector<256x128xf32>
    tpu.vector_store %arg6[%c0_6, %c0_7], %7 {strides = array<i32>} : memref<256x128xf32, #tpu.memory_space<vmem>>, vector<256x128xf32>,
    %c0_i32_8 = arith.constant 0 : i32
    %9 = arith.cmpi eq, %arg1, %c0_i32_8 : i32
    %10 = arith.extui %9 : i1 to i32
    %c0_i32_9 = arith.constant 0 : i32
    %11 = arith.cmpi ne, %10, %c0_i32_9 : i32
    scf.if %11 {
      %c0_10 = arith.constant 0 : index
      %c0_11 = arith.constant 0 : index
      %12 = vector.load %arg6[%c0_10, %c0_11] : memref<256x128xf32, #tpu.memory_space<vmem>>, vector<256x128xf32>
      %c0_12 = arith.constant 0 : index
      %c0_13 = arith.constant 0 : index
      %13 = vector.load %arg4[%c0_12, %c0_13] : memref<1x128xf32, #tpu.memory_space<vmem>>, vector<1x128xf32>
      %14 = vector.broadcast %13 : vector<1x128xf32> to vector<256x128xf32>
      %15 = arith.addf %12, %14 : vector<256x128xf32>
      %16 = tpu.iota {dimensions = array<i32: 1>} : vector<256x128xi32>
      %c8_i32 = arith.constant 8 : i32
      %17 = vector.broadcast %c8_i32 : i32 to vector<256x128xi32>
      %18 = arith.cmpi slt, %16, %17 : vector<256x128xi32>
      %cst_14 = arith.constant -1.000000e+30 : f32
      %19 = vector.broadcast %cst_14 : f32 to vector<256x128xf32>
      %20 = arith.select %18, %15, %19 : vector<256x128xi1>, vector<256x128xf32>
      %cst_15 = arith.constant dense<0xFF800000> : vector<256xf32>
      %21 = vector.multi_reduction <maximumf>, %20, %cst_15 [1] : vector<256x128xf32> to vector<256xf32>
      %22 = vector.shape_cast %21 : vector<256xf32> to vector<256x1xf32>
      %23 = vector.broadcast %22 : vector<256x1xf32> to vector<256x128xf32>
      %24 = arith.subf %20, %23 : vector<256x128xf32>
      %25 = math.exp %24 : vector<256x128xf32>
      %cst_16 = arith.constant dense<0.000000e+00> : vector<256xf32>
      %26 = vector.multi_reduction <add>, %25, %cst_16 [1] : vector<256x128xf32> to vector<256xf32>
      %27 = vector.shape_cast %26 : vector<256xf32> to vector<256x1xf32>
      %28 = math.log %27 : vector<256x1xf32>
      %29 = vector.broadcast %28 : vector<256x1xf32> to vector<256x128xf32>
      %30 = arith.subf %24, %29 : vector<256x128xf32>
      %c0_17 = arith.constant 0 : index
      %c0_18 = arith.constant 0 : index
      %31 = vector.load %arg5[%c0_17, %c0_18] : memref<256x128xf32, #tpu.memory_space<vmem>>, vector<256x128xf32>
      tpu.vector_store %arg5[%c0_17, %c0_18], %30 {strides = array<i32>} : memref<256x128xf32, #tpu.memory_space<vmem>>, vector<256x128xf32>,
    } else {
    }
    return
  }
  func.func @transform_0(%arg0: i32, %arg1: i32) -> (i32, i32) {
    %c0_i32 = arith.constant 0 : i32
    return %arg0, %arg1 : i32, i32
  }
  func.func @transform_1(%arg0: i32, %arg1: i32) -> (i32, i32) {
    %c0_i32 = arith.constant 0 : i32
    %c0_i32_0 = arith.constant 0 : i32
    %c0_i32_1 = arith.constant 0 : i32
    return %c0_i32, %c0_i32_0 : i32, i32
  }
  func.func @transform_2(%arg0: i32, %arg1: i32) -> (i32, i32) {
    %c0_i32 = arith.constant 0 : i32
    %c0_i32_0 = arith.constant 0 : i32
    %c0_i32_1 = arith.constant 0 : i32
    return %c0_i32, %c0_i32_0 : i32, i32
  }
  func.func @transform_3(%arg0: i32, %arg1: i32) -> (i32, i32) {
    %c0_i32 = arith.constant 0 : i32
    %c0_i32_0 = arith.constant 0 : i32
    return %arg0, %c0_i32 : i32, i32
  }
}

</mosaic_0001>

<bundles_post_ra>
// kernel: gcn_forward.3
= control target key start
LH: loop header
LB: loop body
LE: loop exit
PB: predicated region body
PF: predicated region fallthrough
CT: control target
= control target key end

     0   :  { %v702_v48 = vlaneseq  ;;  %s2082_s1 = inlined_call_operand.vmem [shape: bf16[256,128], index: 1, kind: input, shape index: {}]   ;;  %s2083_s0 = inlined_call_operand.vmem [shape: bf16[256,256], index: 0, kind: input, shape index: {}]   ;;  %s2084_s2 = inlined_call_operand.vmem [shape: f32[1,128], index: 2, kind: input, shape index: {}]   ;;  %s2085_s3 = inlined_call_operand.vmem [shape: f32[256,128], index: 3, kind: output, shape index: {}]  }
   0x1   :  { %v1270_v0 = vld [vmem:[%s2082_s1 + $0x40] sm:$0xff]   ;;  %v1272_v2 = vld [vmem:[%s2082_s1 + $0x48] sm:$0xff]   ;;  %v1274_v4 = vld [vmem:[%s2082_s1 + $0x50] sm:$0xff]  }
   0x2   :  { %v1271_v1 = vld [vmem:[%s2082_s1] sm:$0xff]   ;;  %1142 = vmatprep.subr.bf16.mxu0 %v1270_v0  ;;  %1254 = vmatprep.subr.bf16.mxu1 %v1270_v0  ;;  %v1273_v3 = vld [vmem:[%s2082_s1 + $0x8] sm:$0xff]   ;;  %v1275_v5 = vld [vmem:[%s2082_s1 + $0x10] sm:$0xff]   ;;  %v1626_v49 = vand.u32 127, %v702_v48 }
   0x3   :  { %1143 = vmatpush3.bf16.msra.mxu0 %v1271_v1  ;;  %1262 = vmatpush3.bf16.msra.mxu1 %v1271_v1  ;;  %v1276_v6 = vld [vmem:[%s2082_s1 + $0x58] sm:$0xff]   ;;  %v1278_v8 = vld [vmem:[%s2082_s1 + $0x60] sm:$0xff]   ;;  %v1280_v10 = vld [vmem:[%s2082_s1 + $0x68] sm:$0xff]  }
   0x4   :  { %1144 = vmatprep.subr.bf16.mxu0 %v1272_v2  ;;  %1255 = vmatprep.subr.bf16.mxu1 %v1272_v2  ;;  %v1277_v7 = vld [vmem:[%s2082_s1 + $0x18] sm:$0xff]   ;;  %v1279_v9 = vld [vmem:[%s2082_s1 + $0x20] sm:$0xff]   ;;  %v1281_v13 = vld [vmem:[%s2082_s1 + $0x28] sm:$0xff]   ;;  %vm704_vm0 = vcmp.lt.s32.totalorder %v1626_v49, 8 }
   0x5   :  { %v1288_v11 = vld [vmem:[%s2083_s0 + $0x4] ss:$8 sps:$4 sm:$0xff]   ;;  %v1282_v14 = vld [vmem:[%s2082_s1 + $0x70] sm:$0xff]   ;;  %v1284_v16 = vld [vmem:[%s2082_s1 + $0x78] sm:$0xff]  }
   0x6   :  { %v1291_v12 = vld [vmem:[%s2083_s0 + $0x84] ss:$8 sps:$4 sm:$0xff]   ;;  %435 = vmatprep.mubr.bf16.mxu0 %v1288_v11  ;;  %v1283_v15 = vld [vmem:[%s2082_s1 + $0x30] sm:$0xff]   ;;  %v1285_v17 = vld [vmem:[%s2082_s1 + $0x38] sm:$0xff]  }
   0x7   :  { %1145 = vmatpush3.bf16.msra.mxu0 %v1273_v3  ;;  %1263 = vmatpush3.bf16.msra.mxu1 %v1273_v3  ;;  %v1286_v18 = vld [vmem:[%s2083_s0] ss:$8 sps:$4 sm:$0xff]   ;;  %v1292_v20 = vld [vmem:[%s2083_s0 + $0x14] ss:$8 sps:$4 sm:$0xff]   ;;  %v1294_v22 = vld [vmem:[%s2083_s0 + $0x10] ss:$8 sps:$4 sm:$0xff]  }
   0x8   :  { %1146 = vmatprep.subr.bf16.mxu0 %v1274_v4  ;;  %1256 = vmatprep.subr.bf16.mxu1 %v1274_v4  ;;  %v1289_v19 = vld [vmem:[%s2083_s0 + $0x80] ss:$8 sps:$4 sm:$0xff]   ;;  %v1295_v21 = vld [vmem:[%s2083_s0 + $0x94] ss:$8 sps:$4 sm:$0xff]   ;;  %v1297_v23 = vld [vmem:[%s2083_s0 + $0x90] ss:$8 sps:$4 sm:$0xff]  }
   0x9   :  { %499 = vmatprep.mubr.bf16.mxu1 %v1291_v12  ;;  %v1298_v24 = vld [vmem:[%s2083_s0 + $0x24] ss:$8 sps:$4 sm:$0xff]   ;;  %v1300_v26 = vld [vmem:[%s2083_s0 + $0x20] ss:$8 sps:$4 sm:$0xff]   ;;  %v1304_v28 = vld [vmem:[%s2083_s0 + $0x34] ss:$8 sps:$4 sm:$0xff]  }
   0xa   :  { %v1301_v25 = vld [vmem:[%s2083_s0 + $0xa4] ss:$8 sps:$4 sm:$0xff]   ;;  %v1303_v27 = vld [vmem:[%s2083_s0 + $0xa0] ss:$8 sps:$4 sm:$0xff]   ;;  %v1307_v29 = vld [vmem:[%s2083_s0 + $0xb4] ss:$8 sps:$4 sm:$0xff]  }
   0xb   :  { %1147 = vmatpush3.bf16.msra.mxu0 %v1275_v5  ;;  %1264 = vmatpush3.bf16.msra.mxu1 %v1275_v5  ;;  %v1306_v30 = vld [vmem:[%s2083_s0 + $0x30] ss:$8 sps:$4 sm:$0xff]   ;;  %v1310_v32 = vld [vmem:[%s2083_s0 + $0x44] ss:$8 sps:$4 sm:$0xff]   ;;  %v1312_v34 = vld [vmem:[%s2083_s0 + $0x40] ss:$8 sps:$4 sm:$0xff]  }
   0xc   :  { %1148 = vmatprep.subr.bf16.mxu0 %v1276_v6  ;;  %1257 = vmatprep.subr.bf16.mxu1 %v1276_v6  ;;  %v1309_v31 = vld [vmem:[%s2083_s0 + $0xb0] ss:$8 sps:$4 sm:$0xff]   ;;  %v1313_v33 = vld [vmem:[%s2083_s0 + $0xc4] ss:$8 sps:$4 sm:$0xff]   ;;  %v1315_v35 = vld [vmem:[%s2083_s0 + $0xc0] ss:$8 sps:$4 sm:$0xff]  }
   0xd   :  { %v1316_v36 = vld [vmem:[%s2083_s0 + $0x54] ss:$8 sps:$4 sm:$0xff]   ;;  %v1318_v38 = vld [vmem:[%s2083_s0 + $0x50] ss:$8 sps:$4 sm:$0xff]   ;;  %v1322_v40 = vld [vmem:[%s2083_s0 + $0x64] ss:$8 sps:$4 sm:$0xff]  }
   0xe   :  { %v1319_v37 = vld [vmem:[%s2083_s0 + $0xd4] ss:$8 sps:$4 sm:$0xff]   ;;  %v1321_v39 = vld [vmem:[%s2083_s0 + $0xd0] ss:$8 sps:$4 sm:$0xff]   ;;  %v1325_v41 = vld [vmem:[%s2083_s0 + $0xe4] ss:$8 sps:$4 sm:$0xff]  }
   0xf   :  { %1149 = vmatpush3.bf16.msra.mxu0 %v1277_v7  ;;  %1265 = vmatpush3.bf16.msra.mxu1 %v1277_v7  ;;  %v1324_v42 = vld [vmem:[%s2083_s0 + $0x60] ss:$8 sps:$4 sm:$0xff]   ;;  %v1328_v44 = vld [vmem:[%s2083_s0 + $0x74] ss:$8 sps:$4 sm:$0xff]   ;;  %v1330_v46 = vld [vmem:[%s2083_s0 + $0x70] ss:$8 sps:$4 sm:$0xff]  }
  0x10   :  { %1150 = vmatprep.subr.bf16.mxu0 %v1278_v8  ;;  %1258 = vmatprep.subr.bf16.mxu1 %v1278_v8  ;;  %v1327_v43 = vld [vmem:[%s2083_s0 + $0xe0] ss:$8 sps:$4 sm:$0xff]   ;;  %v1331_v45 = vld [vmem:[%s2083_s0 + $0xf4] ss:$8 sps:$4 sm:$0xff]   ;;  %v1333_v47 = vld [vmem:[%s2083_s0 + $0xf0] ss:$8 sps:$4 sm:$0xff]  }
  0x11   :  { %v1631_v54 = vld [vmem:[%s2084_s2] ss:$0 sm:$0xff] }
  0x13   :  { %1151 = vmatpush3.bf16.msra.mxu0 %v1279_v9  ;;  %1266 = vmatpush3.bf16.msra.mxu1 %v1279_v9 }
  0x14   :  { %1152 = vmatprep.subr.bf16.mxu0 %v1280_v10  ;;  %1259 = vmatprep.subr.bf16.mxu1 %v1280_v10 }
  0x17   :  { %1153 = vmatpush3.bf16.msra.mxu0 %v1281_v13  ;;  %1267 = vmatpush3.bf16.msra.mxu1 %v1281_v13 }
  0x18   :  { %1154 = vmatprep.subr.bf16.mxu0 %v1282_v14  ;;  %1260 = vmatprep.subr.bf16.mxu1 %v1282_v14 }
  0x1b   :  { %1155 = vmatpush3.bf16.msra.mxu0 %v1283_v15  ;;  %1268 = vmatpush3.bf16.msra.mxu1 %v1283_v15 }
  0x1c   :  { %1156 = vmatprep.subr.bf16.mxu0 %v1284_v16  ;;  %1261 = vmatprep.subr.bf16.mxu1 %v1284_v16 }
  0x1f   :  { %1157 = vmatpush3.bf16.msra.mxu0 %v1285_v17  ;;  %1269 = vmatpush3.bf16.msra.mxu1 %v1285_v17 }
  0x22   :  { %436 = vmatmul.mubr.bf16.vlgmr.msra.gmra.mrb[0].mxu0 %v1286_v18  ;;  %500 = vmatmul.mubr.bf16.vlgmr.msra.gmra.mrb[0].mxu1 %v1289_v19 }
  0x23   :  { %443 = vmatprep.mubr.bf16.mxu0 %v1292_v20  ;;  %507 = vmatprep.mubr.bf16.mxu1 %v1295_v21 }
  0x2a   :  { %444 = vmatmul.mubr.bf16.gmra.mrb[4].mxu0 %v1294_v22  ;;  %508 = vmatmul.mubr.bf16.gmra.mrb[4].mxu1 %v1297_v23 }
  0x2b   :  { %451 = vmatprep.mubr.bf16.mxu0 %v1298_v24  ;;  %515 = vmatprep.mubr.bf16.mxu1 %v1301_v25 }
  0x32   :  { %452 = vmatmul.mubr.bf16.gmra.mrb[8].mxu0 %v1300_v26  ;;  %516 = vmatmul.mubr.bf16.gmra.mrb[8].mxu1 %v1303_v27 }
  0x33   :  { %459 = vmatprep.mubr.bf16.mxu0 %v1304_v28  ;;  %523 = vmatprep.mubr.bf16.mxu1 %v1307_v29 }
  0x3a   :  { %460 = vmatmul.mubr.bf16.gmra.mrb[12].mxu0 %v1306_v30  ;;  %524 = vmatmul.mubr.bf16.gmra.mrb[12].mxu1 %v1309_v31 }
  0x3b   :  { %467 = vmatprep.mubr.bf16.mxu0 %v1310_v32  ;;  %531 = vmatprep.mubr.bf16.mxu1 %v1313_v33 }
  0x42   :  { %468 = vmatmul.mubr.bf16.gmra.mrb[16].mxu0 %v1312_v34  ;;  %532 = vmatmul.mubr.bf16.gmra.mrb[16].mxu1 %v1315_v35 }
  0x43   :  { %475 = vmatprep.mubr.bf16.mxu0 %v1316_v36  ;;  %539 = vmatprep.mubr.bf16.mxu1 %v1319_v37 }
  0x4a   :  { %476 = vmatmul.mubr.bf16.gmra.mrb[20].mxu0 %v1318_v38  ;;  %540 = vmatmul.mubr.bf16.gmra.mrb[20].mxu1 %v1321_v39 }
  0x4b   :  { %483 = vmatprep.mubr.bf16.mxu0 %v1322_v40  ;;  %547 = vmatprep.mubr.bf16.mxu1 %v1325_v41 }
  0x52   :  { %484 = vmatmul.mubr.bf16.gmra.mrb[24].mxu0 %v1324_v42  ;;  %548 = vmatmul.mubr.bf16.gmra.mrb[24].mxu1 %v1327_v43 }
  0x53   :  { %491 = vmatprep.mubr.bf16.mxu0 %v1328_v44  ;;  %555 = vmatprep.mubr.bf16.mxu1 %v1331_v45 }
  0x5a   :  { %492 = vmatmul.mubr.bf16.gmra.mrb[28].mxu0 %v1330_v46  ;;  %556 = vmatmul.mubr.bf16.gmra.mrb[28].mxu1 %v1333_v47 }
  0xf5   :  { %v1158_v50 = vpop.f32.mrb[0].mxu0  ;;  %v1206_v51 = vpop.f32.mrb[0].mxu1 }
  0xf6   :  { %v1159_v52 = vpop.f32.mrb[1].mxu0  ;;  %v1207_v53 = vpop.f32.mrb[1].mxu1 }
  0xf7   :  { %v1160_v55 = vadd.f32 %v1159_v52, %v1158_v50  ;;  %v1208_v56 = vadd.f32 %v1207_v53, %v1206_v51  ;;  %v1161_v57 = vpop.f32.mrb[2].mxu0  ;;  %v1209_v58 = vpop.f32.mrb[2].mxu1 }
  0xf8   :  { %v1162_v59 = vpop.f32.mrb[3].mxu0  ;;  %v1210_v60 = vpop.f32.mrb[3].mxu1 }
  0xf9   :  { %v1163_v61 = vadd.f32 %v1162_v59, %v1161_v57  ;;  %v1211_v62 = vadd.f32 %v1210_v60, %v1209_v58  ;;  %v670_v63 = vadd.f32 %v1160_v55, %v1631_v54  ;;  %v686_v0 = vadd.f32 %v1208_v56, %v1631_v54 }
  0xfb   :  { %v1638_v1 = vsel %vm704_vm0, %v670_v63, -1e+30  ;;  %v687_v2 = vadd.f32 %v1211_v62, %v1631_v54  ;;  %v1648_v5 = vsel %vm704_vm0, %v686_v0, -1e+30  ;;  %v671_v12 = vadd.f32 %v1163_v61, %v1631_v54 }
  0xfc   :  { %737 = vmax.xlane.f32.xlu0 %v1638_v1 }
  0xfd   :  { %v1164_v3 = vpop.f32.mrb[4].mxu0  ;;  %v1644_v4 = vsel %vm704_vm0, %v687_v2, -1e+30  ;;  %v1212_v6 = vpop.f32.mrb[4].mxu1  ;;  %v1661_v21 = vsel %vm704_vm0, %v671_v12, -1e+30 }
  0xfe   :  { %771 = vmax.xlane.f32.xlu1 %v1644_v4  ;;  %v1165_v7 = vpop.f32.mrb[5].mxu0  ;;  %v1213_v8 = vpop.f32.mrb[5].mxu1 }
  0xff   :  { %v1166_v9 = vadd.f32 %v1165_v7, %v1164_v3  ;;  %v1167_v10 = vpop.f32.mrb[6].mxu0  ;;  %v1214_v11 = vadd.f32 %v1213_v8, %v1212_v6  ;;  %v1215_v13 = vpop.f32.mrb[6].mxu1 }
 0x100   :  { %769 = vmax.xlane.f32.xlu0 %v1648_v5  ;;  %v1168_v14 = vpop.f32.mrb[7].mxu0  ;;  %v1216_v15 = vpop.f32.mrb[7].mxu1 }
 0x101   :  { %v1169_v16 = vadd.f32 %v1168_v14, %v1167_v10  ;;  %v672_v17 = vadd.f32 %v1166_v9, %v1631_v54  ;;  %v1217_v18 = vadd.f32 %v1216_v15, %v1215_v13  ;;  %v688_v19 = vadd.f32 %v1214_v11, %v1631_v54 }
 0x103   :  { %v1657_v20 = vsel %vm704_vm0, %v672_v17, -1e+30  ;;  %v673_v22 = vadd.f32 %v1169_v16, %v1631_v54  ;;  %v689_v23 = vadd.f32 %v1217_v18, %v1631_v54  ;;  %v1673_v26 = vsel %vm704_vm0, %v688_v19, -1e+30 }
 0x104   :  { %741 = vmax.xlane.f32.xlu1 %v1657_v20  ;;  %739 = vmax.xlane.f32.xlu0 %v1661_v21 }
 0x105   :  { %v1170_v24 = vpop.f32.mrb[8].mxu0  ;;  %v1669_v25 = vsel %vm704_vm0, %v673_v22, -1e+30  ;;  %v1218_v27 = vpop.f32.mrb[8].mxu1  ;;  %v1679_v35 = vsel %vm704_vm0, %v689_v23, -1e+30 }
 0x106   :  { %v1171_v28 = vpop.f32.mrb[9].mxu0  ;;  %v1219_v29 = vpop.f32.mrb[9].mxu1 }
 0x107   :  { %v1172_v30 = vadd.f32 %v1171_v28, %v1170_v24  ;;  %v1173_v31 = vpop.f32.mrb[10].mxu0  ;;  %v1220_v32 = vadd.f32 %v1219_v29, %v1218_v27  ;;  %v1221_v33 = vpop.f32.mrb[10].mxu1 }
 0x108   :  { %743 = vmax.xlane.f32.xlu1 %v1669_v25  ;;  %773 = vmax.xlane.f32.xlu0 %v1673_v26  ;;  %v1174_v34 = vpop.f32.mrb[11].mxu0  ;;  %v1222_v36 = vpop.f32.mrb[11].mxu1 }
 0x109   :  { %v1175_v37 = vadd.f32 %v1174_v34, %v1173_v31  ;;  %v674_v38 = vadd.f32 %v1172_v30, %v1631_v54  ;;  %v1223_v39 = vadd.f32 %v1222_v36, %v1221_v33  ;;  %v690_v40 = vadd.f32 %v1220_v32, %v1631_v54 }
 0x10b   :  { %v1685_v41 = vsel %vm704_vm0, %v674_v38, -1e+30  ;;  %v675_v42 = vadd.f32 %v1175_v37, %v1631_v54  ;;  %v691_v43 = vadd.f32 %v1223_v39, %v1631_v54  ;;  %v1697_v46 = vsel %vm704_vm0, %v690_v40, -1e+30 }
 0x10c   :  { %775 = vmax.xlane.f32.xlu1 %v1679_v35  ;;  %745 = vmax.xlane.f32.xlu0 %v1685_v41 }
 0x10d   :  { %v1176_v44 = vpop.f32.mrb[12].mxu0  ;;  %v1693_v45 = vsel %vm704_vm0, %v675_v42, -1e+30  ;;  %v1224_v47 = vpop.f32.mrb[12].mxu1  ;;  %v1703_v57 = vsel %vm704_vm0, %v691_v43, -1e+30 }
 0x10e   :  { %v1177_v48 = vpop.f32.mrb[13].mxu0  ;;  %v1225_v50 = vpop.f32.mrb[13].mxu1 }
 0x10f   :  { %v1178_v51 = vadd.f32 %v1177_v48, %v1176_v44  ;;  %v1179_v52 = vpop.f32.mrb[14].mxu0  ;;  %v1226_v53 = vadd.f32 %v1225_v50, %v1224_v47  ;;  %v1227_v55 = vpop.f32.mrb[14].mxu1 }
 0x110   :  { %747 = vmax.xlane.f32.xlu1 %v1693_v45  ;;  %777 = vmax.xlane.f32.xlu0 %v1697_v46  ;;  %v1180_v56 = vpop.f32.mrb[15].mxu0  ;;  %v1228_v58 = vpop.f32.mrb[15].mxu1 }
 0x111   :  { %v1181_v59 = vadd.f32 %v1180_v56, %v1179_v52  ;;  %v676_v60 = vadd.f32 %v1178_v51, %v1631_v54  ;;  %v1229_v61 = vadd.f32 %v1228_v58, %v1227_v55  ;;  %v692_v62 = vadd.f32 %v1226_v53, %v1631_v54 }
 0x113   :  { %v1709_v63 = vsel %vm704_vm0, %v676_v60, -1e+30  ;;  %v677_v0 = vadd.f32 %v1181_v59, %v1631_v54  ;;  %v693_v2 = vadd.f32 %v1229_v61, %v1631_v54  ;;  %v1721_v7 = vsel %vm704_vm0, %v692_v62, -1e+30 }
 0x114   :  { %779 = vmax.xlane.f32.xlu1 %v1703_v57  ;;  %749 = vmax.xlane.f32.xlu0 %v1709_v63 }
 0x115   :  { %v1182_v3 = vpop.f32.mrb[16].mxu0  ;;  %v1717_v6 = vsel %vm704_vm0, %v677_v0, -1e+30  ;;  %v1230_v8 = vpop.f32.mrb[16].mxu1  ;;  %v1727_v16 = vsel %vm704_vm0, %v693_v2, -1e+30 }
 0x116   :  { %v1183_v9 = vpop.f32.mrb[17].mxu0  ;;  %v1231_v10 = vpop.f32.mrb[17].mxu1 }
 0x117   :  { %v1184_v11 = vadd.f32 %v1183_v9, %v1182_v3  ;;  %v1185_v12 = vpop.f32.mrb[18].mxu0  ;;  %v1232_v13 = vadd.f32 %v1231_v10, %v1230_v8  ;;  %v1233_v14 = vpop.f32.mrb[18].mxu1 }
 0x118   :  { %751 = vmax.xlane.f32.xlu1 %v1717_v6  ;;  %781 = vmax.xlane.f32.xlu0 %v1721_v7  ;;  %v1186_v15 = vpop.f32.mrb[19].mxu0  ;;  %v1234_v17 = vpop.f32.mrb[19].mxu1 }
 0x119   :  { %v1187_v18 = vadd.f32 %v1186_v15, %v1185_v12  ;;  %v678_v19 = vadd.f32 %v1184_v11, %v1631_v54  ;;  %v1235_v22 = vadd.f32 %v1234_v17, %v1233_v14  ;;  %v694_v23 = vadd.f32 %v1232_v13, %v1631_v54 }
 0x11b   :  { %v1733_v24 = vsel %vm704_vm0, %v678_v19, -1e+30  ;;  %v679_v27 = vadd.f32 %v1187_v18, %v1631_v54  ;;  %v695_v28 = vadd.f32 %v1235_v22, %v1631_v54  ;;  %v1745_v31 = vsel %vm704_vm0, %v694_v23, -1e+30 }
 0x11c   :  { %783 = vmax.xlane.f32.xlu1 %v1727_v16  ;;  %753 = vmax.xlane.f32.xlu0 %v1733_v24 }
 0x11d   :  { %v1188_v29 = vpop.f32.mrb[20].mxu0  ;;  %v1741_v30 = vsel %vm704_vm0, %v679_v27, -1e+30  ;;  %v1236_v32 = vpop.f32.mrb[20].mxu1  ;;  %v1751_v42 = vsel %vm704_vm0, %v695_v28, -1e+30 }
 0x11e   :  { %v1189_v33 = vpop.f32.mrb[21].mxu0  ;;  %v1237_v34 = vpop.f32.mrb[21].mxu1 }
 0x11f   :  { %v1190_v36 = vadd.f32 %v1189_v33, %v1188_v29  ;;  %v1191_v37 = vpop.f32.mrb[22].mxu0  ;;  %v1238_v38 = vadd.f32 %v1237_v34, %v1236_v32  ;;  %v1239_v39 = vpop.f32.mrb[22].mxu1 }
 0x120   :  { %755 = vmax.xlane.f32.xlu1 %v1741_v30  ;;  %785 = vmax.xlane.f32.xlu0 %v1745_v31  ;;  %v1192_v40 = vpop.f32.mrb[23].mxu0  ;;  %v1240_v43 = vpop.f32.mrb[23].mxu1 }
 0x121   :  { %v1193_v44 = vadd.f32 %v1192_v40, %v1191_v37  ;;  %v680_v47 = vadd.f32 %v1190_v36, %v1631_v54  ;;  %v1241_v48 = vadd.f32 %v1240_v43, %v1239_v39  ;;  %v696_v50 = vadd.f32 %v1238_v38, %v1631_v54 }
 0x123   :  { %v1757_v51 = vsel %vm704_vm0, %v680_v47, -1e+30  ;;  %v681_v52 = vadd.f32 %v1193_v44, %v1631_v54  ;;  %v697_v53 = vadd.f32 %v1241_v48, %v1631_v54  ;;  %v1769_v58 = vsel %vm704_vm0, %v696_v50, -1e+30 }
 0x124   :  { %787 = vmax.xlane.f32.xlu1 %v1751_v42  ;;  %757 = vmax.xlane.f32.xlu0 %v1757_v51 }
 0x125   :  { %v1194_v55 = vpop.f32.mrb[24].mxu0  ;;  %v1765_v56 = vsel %vm704_vm0, %v681_v52, -1e+30  ;;  %v1242_v59 = vpop.f32.mrb[24].mxu1  ;;  %v1775_v9 = vsel %vm704_vm0, %v697_v53, -1e+30 }
 0x126   :  { %v1195_v60 = vpop.f32.mrb[25].mxu0  ;;  %v1243_v61 = vpop.f32.mrb[25].mxu1 }
 0x127   :  { %v1196_v62 = vadd.f32 %v1195_v60, %v1194_v55  ;;  %v1197_v0 = vpop.f32.mrb[26].mxu0  ;;  %v1244_v2 = vadd.f32 %v1243_v61, %v1242_v59  ;;  %v1245_v3 = vpop.f32.mrb[26].mxu1 }
 0x128   :  { %759 = vmax.xlane.f32.xlu1 %v1765_v56  ;;  %789 = vmax.xlane.f32.xlu0 %v1769_v58  ;;  %v1198_v8 = vpop.f32.mrb[27].mxu0  ;;  %v1246_v10 = vpop.f32.mrb[27].mxu1 }
 0x129   :  { %v1199_v11 = vadd.f32 %v1198_v8, %v1197_v0  ;;  %v682_v12 = vadd.f32 %v1196_v62, %v1631_v54  ;;  %v1247_v13 = vadd.f32 %v1246_v10, %v1245_v3  ;;  %v698_v14 = vadd.f32 %v1244_v2, %v1631_v54 }
 0x12b   :  { %v1781_v15 = vsel %vm704_vm0, %v682_v12, -1e+30  ;;  %v683_v17 = vadd.f32 %v1199_v11, %v1631_v54  ;;  %v699_v18 = vadd.f32 %v1247_v13, %v1631_v54  ;;  %v1793_v23 = vsel %vm704_vm0, %v698_v14, -1e+30 }
 0x12c   :  { %791 = vmax.xlane.f32.xlu1 %v1775_v9  ;;  %761 = vmax.xlane.f32.xlu0 %v1781_v15 }
 0x12d   :  { %v1200_v19 = vpop.f32.mrb[28].mxu0  ;;  %v1789_v22 = vsel %vm704_vm0, %v683_v17, -1e+30  ;;  %v1248_v27 = vpop.f32.mrb[28].mxu1  ;;  %v1799_v38 = vsel %vm704_vm0, %v699_v18, -1e+30 }
 0x12e   :  { %v1201_v28 = vpop.f32.mrb[29].mxu0  ;;  %v1249_v29 = vpop.f32.mrb[29].mxu1 }
 0x12f   :  { %v1202_v32 = vadd.f32 %v1201_v28, %v1200_v19  ;;  %v1203_v33 = vpop.f32.mrb[30].mxu0  ;;  %v1250_v34 = vadd.f32 %v1249_v29, %v1248_v27  ;;  %v1251_v36 = vpop.f32.mrb[30].mxu1 }
 0x130   :  { %763 = vmax.xlane.f32.xlu1 %v1789_v22  ;;  %793 = vmax.xlane.f32.xlu0 %v1793_v23  ;;  %v1204_v37 = vpop.f32.mrb[31].mxu0  ;;  %v1252_v39 = vpop.f32.mrb[31].mxu1 }
 0x131   :  { %v1205_v40 = vadd.f32 %v1204_v37, %v1203_v33  ;;  %v684_v43 = vadd.f32 %v1202_v32, %v1631_v54  ;;  %v1253_v44 = vadd.f32 %v1252_v39, %v1251_v36  ;;  %v700_v47 = vadd.f32 %v1250_v34, %v1631_v54 }
 0x133   :  { %v1805_v48 = vsel %vm704_vm0, %v684_v43, -1e+30  ;;  %v685_v50 = vadd.f32 %v1205_v40, %v1631_v54  ;;  %v701_v52 = vadd.f32 %v1253_v44, %v1631_v54  ;;  %v1817_v55 = vsel %vm704_vm0, %v700_v47, -1e+30 }
 0x134   :  { %795 = vmax.xlane.f32.xlu1 %v1799_v38  ;;  %765 = vmax.xlane.f32.xlu0 %v1805_v48 }
 0x135   :  { %v1813_v53 = vsel %vm704_vm0, %v685_v50, -1e+30  ;;  %v1821_v59 = vsel %vm704_vm0, %v701_v52, -1e+30 }
 0x138   :  { %767 = vmax.xlane.f32.xlu1 %v1813_v53  ;;  %797 = vmax.xlane.f32.xlu0 %v1817_v55 }
 0x13c   :  { %799 = vmax.xlane.f32.xlu1 %v1821_v59 }
 0x189   :  { %v738_v54 = vpop.xlane.xlu0 %737 }
 0x18a   :  { %v1827_v60 = vsub.f32 %v1638_v1, %v738_v54 }
 0x18b   :  { %v772_v62 = vpop.xlane.xlu1 %771 }
 0x18c   :  { %v833_v61 = vmul.f32 1.442695, %v1827_v60  ;;  %v1835_v10 = vsub.f32 %v1644_v4, %v772_v62 }
 0x18d   :  { %v770_v0 = vpop.xlane.xlu0 %769 }
 0x18e   :  { %1334 = vpow2.f32 %v833_v61  ;;  %v1831_v2 = vsub.f32 %v1648_v5, %v770_v0  ;;  %v867_v17 = vmul.f32 1.442695, %v1835_v10 }
 0x190   :  { %v865_v49 = vmul.f32 1.442695, %v1831_v2 }
 0x191   :  { %v742_v3 = vpop.xlane.xlu1 %741  ;;  %v740_v8 = vpop.xlane.xlu0 %739 }
 0x192   :  { %1336 = vpow2.f32 %v865_v49  ;;  %v1838_v11 = vsub.f32 %v1657_v20, %v742_v3  ;;  %v1841_v1 = vsub.f32 %v1661_v21, %v740_v8 }
 0x194   :  { %v837_v12 = vmul.f32 1.442695, %v1838_v11  ;;  %v835_v13 = vmul.f32 1.442695, %v1841_v1 }
 0x195   :  { %v744_v5 = vpop.xlane.xlu1 %743  ;;  %v774_v14 = vpop.xlane.xlu0 %773 }
 0x196   :  { %1338 = vpow2.f32 %v837_v12  ;;  %v1847_v18 = vsub.f32 %v1669_v25, %v744_v5  ;;  %v1850_v4 = vsub.f32 %v1673_v26, %v774_v14 }
 0x197   :  { %1340 = vpow2.f32 %v835_v13 }
 0x198   :  { %v1335_v20 = vpop.eup %1334  ;;  %v869_v21 = vmul.f32 1.442695, %v1850_v4  ;;  %1342 = vpow2.f32 %v867_v17  ;;  %v839_v28 = vmul.f32 1.442695, %v1847_v18 }
 0x199   :  { %v776_v19 = vpop.xlane.xlu1 %775  ;;  %897 = vadd.xlane.f32.xlu0 %v1335_v20  ;;  %v746_v27 = vpop.xlane.xlu0 %745 }
 0x19a   :  { %v1855_v29 = vsub.f32 %v1679_v35, %v776_v19  ;;  %v1858_v32 = vsub.f32 %v1685_v41, %v746_v27  ;;  %1344 = vpow2.f32 %v869_v21 }
 0x19b   :  { %1346 = vpow2.f32 %v839_v28 }
 0x19c   :  { %v1337_v25 = vpop.eup %1336  ;;  %v841_v26 = vmul.f32 1.442695, %v1858_v32  ;;  %v871_v36 = vmul.f32 1.442695, %v1855_v29 }
 0x19d   :  { %v748_v33 = vpop.xlane.xlu1 %747  ;;  %929 = vadd.xlane.f32.xlu0 %v1337_v25  ;;  %v778_v34 = vpop.xlane.xlu0 %777 }
 0x19e   :  { %v1863_v37 = vsub.f32 %v1693_v45, %v748_v33  ;;  %v1866_v39 = vsub.f32 %v1697_v46, %v778_v34  ;;  %1348 = vpow2.f32 %v841_v26 }
 0x19f   :  { %1350 = vpow2.f32 %v871_v36 }
 0x1a0   :  { %v1339_v35 = vpop.eup %1338  ;;  %v873_v41 = vmul.f32 1.442695, %v1866_v39  ;;  %v843_v47 = vmul.f32 1.442695, %v1863_v37 }
 0x1a1   :  { %v1341_v40 = vpop.eup %1340  ;;  %v780_v43 = vpop.xlane.xlu1 %779  ;;  %901 = vadd.xlane.f32.xlu0 %v1339_v35 }
 0x1a2   :  { %v750_v44 = vpop.xlane.xlu0 %749  ;;  %v1871_v50 = vsub.f32 %v1703_v57, %v780_v43  ;;  %899 = vadd.xlane.f32.xlu1 %v1341_v40  ;;  %1352 = vpow2.f32 %v873_v41  ;;  %v1343_v46 = vpop.eup %1342 }
 0x1a3   :  { %v1874_v45 = vsub.f32 %v1709_v63, %v750_v44  ;;  %1354 = vpow2.f32 %v843_v47 }
 0x1a4   :  { %v1345_v54 = vpop.eup %1344  ;;  %v875_v0 = vmul.f32 1.442695, %v1871_v50 }
 0x1a5   :  { %v845_v52 = vmul.f32 1.442695, %v1874_v45  ;;  %v752_v61 = vpop.xlane.xlu1 %751  ;;  %933 = vadd.xlane.f32.xlu0 %v1345_v54  ;;  %v1347_v63 = vpop.eup %1346 }
 0x1a6   :  { %v782_v62 = vpop.xlane.xlu0 %781  ;;  %v1879_v49 = vsub.f32 %v1717_v6, %v752_v61  ;;  %931 = vadd.xlane.f32.xlu1 %v1343_v46 }
 0x1a7   :  { %v1882_v57 = vsub.f32 %v1721_v7, %v782_v62  ;;  %1356 = vpow2.f32 %v845_v52 }
 0x1a8   :  { %v1349_v8 = vpop.eup %1348  ;;  %1358 = vpow2.f32 %v875_v0  ;;  %v847_v5 = vmul.f32 1.442695, %v1879_v49 }
 0x1a9   :  { %v877_v3 = vmul.f32 1.442695, %v1882_v57  ;;  %v784_v12 = vpop.xlane.xlu1 %783  ;;  %905 = vadd.xlane.f32.xlu0 %v1349_v8  ;;  %v1351_v7 = vpop.eup %1350 }
 0x1aa   :  { %v754_v13 = vpop.xlane.xlu0 %753  ;;  %v1887_v14 = vsub.f32 %v1727_v16, %v784_v12  ;;  %903 = vadd.xlane.f32.xlu1 %v1347_v63 }
 0x1ab   :  { %v1890_v6 = vsub.f32 %v1733_v24, %v754_v13  ;;  %1360 = vpow2.f32 %v877_v3 }
 0x1ac   :  { %v1353_v20 = vpop.eup %1352  ;;  %1362 = vpow2.f32 %v847_v5  ;;  %v879_v27 = vmul.f32 1.442695, %v1887_v14 }
 0x1ad   :  { %v849_v17 = vmul.f32 1.442695, %v1890_v6  ;;  %v756_v21 = vpop.xlane.xlu1 %755  ;;  %937 = vadd.xlane.f32.xlu0 %v1353_v20  ;;  %v1355_v24 = vpop.eup %1354 }
 0x1ae   :  { %v786_v19 = vpop.xlane.xlu0 %785  ;;  %v1895_v28 = vsub.f32 %v1741_v30, %v756_v21  ;;  %935 = vadd.xlane.f32.xlu1 %v1351_v7 }
 0x1af   :  { %v1898_v16 = vsub.f32 %v1745_v31, %v786_v19  ;;  %1364 = vpow2.f32 %v849_v17 }
 0x1b0   :  { %1366 = vpow2.f32 %v879_v27  ;;  %v851_v36 = vmul.f32 1.442695, %v1895_v28 }
 0x1b1   :  { %v881_v25 = vmul.f32 1.442695, %v1898_v16  ;;  %v1357_v26 = vpop.eup %1356  ;;  %v788_v33 = vpop.xlane.xlu1 %787 }
 0x1b2   :  { %v758_v34 = vpop.xlane.xlu0 %757  ;;  %v1903_v35 = vsub.f32 %v1751_v42, %v788_v33  ;;  %907 = vadd.xlane.f32.xlu1 %v1355_v24  ;;  %909 = vadd.xlane.f32.xlu0 %v1357_v26  ;;  %v1359_v31 = vpop.eup %1358 }
 0x1b3   :  { %v1906_v30 = vsub.f32 %v1757_v51, %v758_v34  ;;  %1368 = vpow2.f32 %v881_v25 }
 0x1b4   :  { %1370 = vpow2.f32 %v851_v36  ;;  %v883_v47 = vmul.f32 1.442695, %v1903_v35 }
 0x1b5   :  { %v853_v41 = vmul.f32 1.442695, %v1906_v30  ;;  %v1361_v40 = vpop.eup %1360  ;;  %v760_v43 = vpop.xlane.xlu1 %759 }
 0x1b6   :  { %v790_v44 = vpop.xlane.xlu0 %789  ;;  %v1911_v46 = vsub.f32 %v1765_v56, %v760_v43  ;;  %939 = vadd.xlane.f32.xlu1 %v1359_v31  ;;  %941 = vadd.xlane.f32.xlu0 %v1361_v40  ;;  %v1363_v51 = vpop.eup %1362 }
 0x1b7   :  { %v1914_v42 = vsub.f32 %v1769_v58, %v790_v44  ;;  %1372 = vpow2.f32 %v853_v41 }
 0x1b8   :  { %1374 = vpow2.f32 %v883_v47  ;;  %v855_v0 = vmul.f32 1.442695, %v1911_v46 }
 0x1b9   :  { %v885_v52 = vmul.f32 1.442695, %v1914_v42  ;;  %v1365_v54 = vpop.eup %1364  ;;  %v792_v61 = vpop.xlane.xlu1 %791 }
 0x1ba   :  { %v762_v62 = vpop.xlane.xlu0 %761  ;;  %v1919_v63 = vsub.f32 %v1775_v9, %v792_v61  ;;  %911 = vadd.xlane.f32.xlu1 %v1363_v51  ;;  %913 = vadd.xlane.f32.xlu0 %v1365_v54  ;;  %v1367_v58 = vpop.eup %1366 }
 0x1bb   :  { %v1922_v56 = vsub.f32 %v1781_v15, %v762_v62  ;;  %1376 = vpow2.f32 %v885_v52 }
 0x1bc   :  { %1378 = vpow2.f32 %v855_v0  ;;  %v887_v5 = vmul.f32 1.442695, %v1919_v63 }
 0x1bd   :  { %v857_v3 = vmul.f32 1.442695, %v1922_v56  ;;  %v1369_v8 = vpop.eup %1368  ;;  %v764_v12 = vpop.xlane.xlu1 %763 }
 0x1be   :  { %v794_v13 = vpop.xlane.xlu0 %793  ;;  %v1927_v7 = vsub.f32 %v1789_v22, %v764_v12  ;;  %943 = vadd.xlane.f32.xlu1 %v1367_v58  ;;  %945 = vadd.xlane.f32.xlu0 %v1369_v8  ;;  %v1371_v15 = vpop.eup %1370 }
 0x1bf   :  { %v1930_v9 = vsub.f32 %v1793_v23, %v794_v13  ;;  %1380 = vpow2.f32 %v857_v3 }
 0x1c0   :  { %1382 = vpow2.f32 %v887_v5  ;;  %v859_v27 = vmul.f32 1.442695, %v1927_v7 }
 0x1c1   :  { %v889_v17 = vmul.f32 1.442695, %v1930_v9  ;;  %v1373_v20 = vpop.eup %1372  ;;  %v796_v21 = vpop.xlane.xlu1 %795 }
 0x1c2   :  { %v766_v19 = vpop.xlane.xlu0 %765  ;;  %v1935_v24 = vsub.f32 %v1799_v38, %v796_v21  ;;  %915 = vadd.xlane.f32.xlu1 %v1371_v15  ;;  %917 = vadd.xlane.f32.xlu0 %v1373_v20  ;;  %v1375_v23 = vpop.eup %1374 }
 0x1c3   :  { %v1938_v22 = vsub.f32 %v1805_v48, %v766_v19  ;;  %1384 = vpow2.f32 %v889_v17 }
 0x1c4   :  { %1386 = vpow2.f32 %v859_v27  ;;  %v891_v36 = vmul.f32 1.442695, %v1935_v24 }
 0x1c5   :  { %v861_v25 = vmul.f32 1.442695, %v1938_v22  ;;  %v1377_v26 = vpop.eup %1376  ;;  %v768_v33 = vpop.xlane.xlu1 %767 }
 0x1c6   :  { %v798_v34 = vpop.xlane.xlu0 %797  ;;  %947 = vadd.xlane.f32.xlu1 %v1375_v23  ;;  %949 = vadd.xlane.f32.xlu0 %v1377_v26  ;;  %v1946_v31 = vsub.f32 %v1813_v53, %v768_v33  ;;  %v1379_v48 = vpop.eup %1378 }
 0x1c7   :  { %v1943_v38 = vsub.f32 %v1817_v55, %v798_v34  ;;  %1388 = vpow2.f32 %v861_v25 }
 0x1c8   :  { %1390 = vpow2.f32 %v891_v36  ;;  %v863_v44 = vmul.f32 1.442695, %v1946_v31 }
 0x1c9   :  { %v893_v41 = vmul.f32 1.442695, %v1943_v38  ;;  %v1381_v40 = vpop.eup %1380  ;;  %v800_v43 = vpop.xlane.xlu1 %799 }
 0x1ca   :  { %919 = vadd.xlane.f32.xlu1 %v1379_v48  ;;  %921 = vadd.xlane.f32.xlu0 %v1381_v40  ;;  %v1951_v47 = vsub.f32 %v1821_v59, %v800_v43  ;;  %v1383_v55 = vpop.eup %1382 }
 0x1cb   :  { %1392 = vpow2.f32 %v893_v41 }
 0x1cc   :  { %1394 = vpow2.f32 %v863_v44  ;;  %v895_v53 = vmul.f32 1.442695, %v1951_v47 }
 0x1cd   :  { %v1385_v51 = vpop.eup %1384 }
 0x1ce   :  { %951 = vadd.xlane.f32.xlu1 %v1383_v55  ;;  %953 = vadd.xlane.f32.xlu0 %v1385_v51  ;;  %v1387_v52 = vpop.eup %1386  ;;  %1396 = vpow2.f32 %v895_v53 }
 0x1d1   :  { %v1389_v54 = vpop.eup %1388 }
 0x1d2   :  { %923 = vadd.xlane.f32.xlu1 %v1387_v52  ;;  %925 = vadd.xlane.f32.xlu0 %v1389_v54  ;;  %v1391_v61 = vpop.eup %1390 }
 0x1d5   :  { %v1393_v62 = vpop.eup %1392 }
 0x1d6   :  { %955 = vadd.xlane.f32.xlu1 %v1391_v61  ;;  %957 = vadd.xlane.f32.xlu0 %v1393_v62  ;;  %v1395_v0 = vpop.eup %1394 }
 0x1d8   :  { %v1397_v59 = vpop.eup %1396 }
 0x1da   :  { %927 = vadd.xlane.f32.xlu1 %v1395_v0 }
 0x1de   :  { %959 = vadd.xlane.f32.xlu1 %v1397_v59 }
 0x226   :  { %v898_v58 = vpop.xlane.xlu0 %897 }
 0x227   :  { %1398 = vlog2.f32 %v898_v58 }
 0x22a   :  { %v930_v3 = vpop.xlane.xlu0 %929 }
 0x22b   :  { %1400 = vlog2.f32 %v930_v3 }
 0x22e   :  { %v902_v8 = vpop.xlane.xlu0 %901 }
 0x22f   :  { %v900_v12 = vpop.xlane.xlu1 %899  ;;  %1402 = vlog2.f32 %v902_v8 }
 0x230   :  { %1404 = vlog2.f32 %v900_v12 }
 0x231   :  { %v1399_v13 = vpop.eup %1398 }
 0x232   :  { %v962_v5 = vmul.f32 0.6931472, %v1399_v13  ;;  %v934_v17 = vpop.xlane.xlu0 %933 }
 0x233   :  { %v932_v15 = vpop.xlane.xlu1 %931 }
 0x234   :  { %v1025_v20 = vsub.f32 %v1827_v60, %v962_v5  ;;  %1406 = vlog2.f32 %v932_v15 }
 0x235   :  { %v1401_v21 = vpop.eup %1400  ;;  %1408 = vlog2.f32 %v934_v17 }
 0x236   :  { %1057 = vst [vmem:[%s2085_s3] sm:$0xff] %v1025_v20  ;;  %v994_v19 = vmul.f32 0.6931472, %v1401_v21  ;;  %v906_v23 = vpop.xlane.xlu0 %905 }
 0x237   :  { %v904_v27 = vpop.xlane.xlu1 %903 }
 0x238   :  { %v1041_v25 = vsub.f32 %v1831_v2, %v994_v19  ;;  %1410 = vlog2.f32 %v904_v27 }
 0x239   :  { %v1403_v26 = vpop.eup %1402  ;;  %1412 = vlog2.f32 %v906_v23 }
 0x23a   :  { %v1405_v33 = vpop.eup %1404  ;;  %1073 = vst [vmem:[%s2085_s3 + $0x80] sm:$0xff] %v1041_v25  ;;  %v966_v60 = vmul.f32 0.6931472, %v1403_v26  ;;  %v938_v48 = vpop.xlane.xlu0 %937 }
 0x23b   :  { %v964_v34 = vmul.f32 0.6931472, %v1405_v33  ;;  %v936_v36 = vpop.xlane.xlu1 %935 }
 0x23c   :  { %v1027_v41 = vsub.f32 %v1838_v11, %v966_v60  ;;  %1414 = vlog2.f32 %v936_v36 }
 0x23d   :  { %v1026_v40 = vsub.f32 %v1841_v1, %v964_v34  ;;  %1416 = vlog2.f32 %v938_v48 }
 0x23e   :  { %v1407_v43 = vpop.eup %1406  ;;  %1059 = vst [vmem:[%s2085_s3 + $0x10] sm:$0xff] %v1027_v41 }
 0x23f   :  { %v1409_v2 = vpop.eup %1408  ;;  %1058 = vst [vmem:[%s2085_s3 + $0x8] sm:$0xff] %v1026_v40  ;;  %v996_v44 = vmul.f32 0.6931472, %v1407_v43  ;;  %v908_v55 = vpop.xlane.xlu1 %907 }
 0x240   :  { %v910_v51 = vpop.xlane.xlu0 %909  ;;  %v998_v53 = vmul.f32 0.6931472, %v1409_v2  ;;  %1418 = vlog2.f32 %v908_v55 }
 0x241   :  { %v1042_v11 = vsub.f32 %v1835_v10, %v996_v44  ;;  %1420 = vlog2.f32 %v910_v51 }
 0x242   :  { %v1411_v1 = vpop.eup %1410  ;;  %v1043_v52 = vsub.f32 %v1850_v4, %v998_v53 }
 0x243   :  { %v1413_v54 = vpop.eup %1412  ;;  %1074 = vst [vmem:[%s2085_s3 + $0x88] sm:$0xff] %v1042_v11  ;;  %v968_v61 = vmul.f32 0.6931472, %v1411_v1  ;;  %v940_v62 = vpop.xlane.xlu1 %939 }
 0x244   :  { %v942_v0 = vpop.xlane.xlu0 %941  ;;  %1075 = vst [vmem:[%s2085_s3 + $0x90] sm:$0xff] %v1043_v52  ;;  %v970_v59 = vmul.f32 0.6931472, %v1413_v54  ;;  %1422 = vlog2.f32 %v940_v62 }
 0x245   :  { %v1028_v10 = vsub.f32 %v1847_v18, %v968_v61  ;;  %1424 = vlog2.f32 %v942_v0 }
 0x246   :  { %v1415_v58 = vpop.eup %1414  ;;  %v1029_v4 = vsub.f32 %v1858_v32, %v970_v59 }
 0x247   :  { %v1417_v3 = vpop.eup %1416  ;;  %1060 = vst [vmem:[%s2085_s3 + $0x18] sm:$0xff] %v1028_v10  ;;  %v1000_v8 = vmul.f32 0.6931472, %v1415_v58  ;;  %v912_v12 = vpop.xlane.xlu1 %911 }
 0x248   :  { %v914_v13 = vpop.xlane.xlu0 %913  ;;  %1061 = vst [vmem:[%s2085_s3 + $0x20] sm:$0xff] %v1029_v4  ;;  %v1002_v5 = vmul.f32 0.6931472, %v1417_v3  ;;  %1426 = vlog2.f32 %v912_v12 }
 0x249   :  { %v1044_v18 = vsub.f32 %v1855_v29, %v1000_v8  ;;  %1428 = vlog2.f32 %v914_v13 }
 0x24a   :  { %v1419_v15 = vpop.eup %1418  ;;  %v1045_v32 = vsub.f32 %v1866_v39, %v1002_v5 }
 0x24b   :  { %v1421_v17 = vpop.eup %1420  ;;  %1076 = vst [vmem:[%s2085_s3 + $0x98] sm:$0xff] %v1044_v18  ;;  %v972_v20 = vmul.f32 0.6931472, %v1419_v15  ;;  %v944_v21 = vpop.xlane.xlu1 %943 }
 0x24c   :  { %v946_v19 = vpop.xlane.xlu0 %945  ;;  %1077 = vst [vmem:[%s2085_s3 + $0xa0] sm:$0xff] %v1045_v32  ;;  %v974_v27 = vmul.f32 0.6931472, %v1421_v17  ;;  %1430 = vlog2.f32 %v944_v21 }
 0x24d   :  { %v1030_v29 = vsub.f32 %v1863_v37, %v972_v20  ;;  %1432 = vlog2.f32 %v946_v19 }
 0x24e   :  { %v1423_v23 = vpop.eup %1422  ;;  %v1031_v39 = vsub.f32 %v1874_v45, %v974_v27 }
 0x24f   :  { %v1425_v25 = vpop.eup %1424  ;;  %1062 = vst [vmem:[%s2085_s3 + $0x28] sm:$0xff] %v1030_v29  ;;  %v1004_v26 = vmul.f32 0.6931472, %v1423_v23  ;;  %v916_v33 = vpop.xlane.xlu1 %915 }
 0x250   :  { %v918_v60 = vpop.xlane.xlu0 %917  ;;  %1063 = vst [vmem:[%s2085_s3 + $0x30] sm:$0xff] %v1031_v39  ;;  %v1006_v34 = vmul.f32 0.6931472, %v1425_v25  ;;  %1434 = vlog2.f32 %v916_v33 }
 0x251   :  { %v1046_v37 = vsub.f32 %v1871_v50, %v1004_v26  ;;  %1436 = vlog2.f32 %v918_v60 }
 0x252   :  { %v1427_v36 = vpop.eup %1426  ;;  %v1047_v45 = vsub.f32 %v1882_v57, %v1006_v34 }
 0x253   :  { %v1429_v48 = vpop.eup %1428  ;;  %1078 = vst [vmem:[%s2085_s3 + $0xa8] sm:$0xff] %v1046_v37  ;;  %v976_v41 = vmul.f32 0.6931472, %v1427_v36  ;;  %v948_v40 = vpop.xlane.xlu1 %947 }
 0x254   :  { %v950_v43 = vpop.xlane.xlu0 %949  ;;  %1079 = vst [vmem:[%s2085_s3 + $0xb0] sm:$0xff] %v1047_v45  ;;  %v978_v2 = vmul.f32 0.6931472, %v1429_v48  ;;  %1438 = vlog2.f32 %v948_v40 }
 0x255   :  { %v1032_v50 = vsub.f32 %v1879_v49, %v976_v41  ;;  %1440 = vlog2.f32 %v950_v43 }
 0x256   :  { %v1431_v44 = vpop.eup %1430  ;;  %v1033_v57 = vsub.f32 %v1890_v6, %v978_v2 }
 0x257   :  { %v1433_v55 = vpop.eup %1432  ;;  %1064 = vst [vmem:[%s2085_s3 + $0x38] sm:$0xff] %v1032_v50  ;;  %v1008_v51 = vmul.f32 0.6931472, %v1431_v44  ;;  %v920_v53 = vpop.xlane.xlu1 %919 }
 0x258   :  { %v922_v11 = vpop.xlane.xlu0 %921  ;;  %1065 = vst [vmem:[%s2085_s3 + $0x40] sm:$0xff] %v1033_v57  ;;  %v1010_v1 = vmul.f32 0.6931472, %v1433_v55  ;;  %1442 = vlog2.f32 %v920_v53 }
 0x259   :  { %v1048_v49 = vsub.f32 %v1887_v14, %v1008_v51  ;;  %1444 = vlog2.f32 %v922_v11 }
 0x25a   :  { %v1435_v52 = vpop.eup %1434  ;;  %v1049_v6 = vsub.f32 %v1898_v16, %v1010_v1 }
 0x25b   :  { %v1437_v54 = vpop.eup %1436  ;;  %1080 = vst [vmem:[%s2085_s3 + $0xb8] sm:$0xff] %v1048_v49  ;;  %v980_v61 = vmul.f32 0.6931472, %v1435_v52  ;;  %v952_v62 = vpop.xlane.xlu1 %951 }
 0x25c   :  { %v954_v0 = vpop.xlane.xlu0 %953  ;;  %1081 = vst [vmem:[%s2085_s3 + $0xc0] sm:$0xff] %v1049_v6  ;;  %v982_v59 = vmul.f32 0.6931472, %v1437_v54  ;;  %1446 = vlog2.f32 %v952_v62 }
 0x25d   :  { %v1034_v14 = vsub.f32 %v1895_v28, %v980_v61  ;;  %1448 = vlog2.f32 %v954_v0 }
 0x25e   :  { %v1439_v10 = vpop.eup %1438  ;;  %v1035_v16 = vsub.f32 %v1906_v30, %v982_v59 }
 0x25f   :  { %v1441_v58 = vpop.eup %1440  ;;  %1066 = vst [vmem:[%s2085_s3 + $0x48] sm:$0xff] %v1034_v14  ;;  %v1012_v4 = vmul.f32 0.6931472, %v1439_v10  ;;  %v924_v3 = vpop.xlane.xlu1 %923 }
 0x260   :  { %v926_v8 = vpop.xlane.xlu0 %925  ;;  %1067 = vst [vmem:[%s2085_s3 + $0x50] sm:$0xff] %v1035_v16  ;;  %v1014_v12 = vmul.f32 0.6931472, %v1441_v58  ;;  %1450 = vlog2.f32 %v924_v3 }
 0x261   :  { %v1050_v28 = vsub.f32 %v1903_v35, %v1012_v4  ;;  %1452 = vlog2.f32 %v926_v8 }
 0x262   :  { %v1443_v13 = vpop.eup %1442  ;;  %v1051_v30 = vsub.f32 %v1914_v42, %v1014_v12 }
 0x263   :  { %v1445_v5 = vpop.eup %1444  ;;  %1082 = vst [vmem:[%s2085_s3 + $0xc8] sm:$0xff] %v1050_v28  ;;  %v984_v18 = vmul.f32 0.6931472, %v1443_v13  ;;  %v956_v15 = vpop.xlane.xlu1 %955 }
 0x264   :  { %v958_v32 = vpop.xlane.xlu0 %957  ;;  %1083 = vst [vmem:[%s2085_s3 + $0xd0] sm:$0xff] %v1051_v30  ;;  %v986_v17 = vmul.f32 0.6931472, %v1445_v5  ;;  %1454 = vlog2.f32 %v956_v15 }
 0x265   :  { %v1036_v35 = vsub.f32 %v1911_v46, %v984_v18  ;;  %1456 = vlog2.f32 %v958_v32 }
 0x266   :  { %v1447_v20 = vpop.eup %1446  ;;  %v1037_v42 = vsub.f32 %v1922_v56, %v986_v17 }
 0x267   :  { %v1449_v21 = vpop.eup %1448  ;;  %1068 = vst [vmem:[%s2085_s3 + $0x58] sm:$0xff] %v1036_v35  ;;  %v1016_v19 = vmul.f32 0.6931472, %v1447_v20  ;;  %v928_v27 = vpop.xlane.xlu1 %927 }
 0x268   :  { %1069 = vst [vmem:[%s2085_s3 + $0x60] sm:$0xff] %v1037_v42  ;;  %v1018_v29 = vmul.f32 0.6931472, %v1449_v21  ;;  %1458 = vlog2.f32 %v928_v27 }
 0x269   :  { %v1052_v23 = vsub.f32 %v1919_v63, %v1016_v19 }
 0x26a   :  { %v1451_v46 = vpop.eup %1450  ;;  %v1053_v39 = vsub.f32 %v1930_v9, %v1018_v29 }
 0x26b   :  { %v1453_v25 = vpop.eup %1452  ;;  %1084 = vst [vmem:[%s2085_s3 + $0xd8] sm:$0xff] %v1052_v23  ;;  %v988_v56 = vmul.f32 0.6931472, %v1451_v46  ;;  %v960_v26 = vpop.xlane.xlu1 %959 }
 0x26c   :  { %1085 = vst [vmem:[%s2085_s3 + $0xe0] sm:$0xff] %v1053_v39  ;;  %v990_v33 = vmul.f32 0.6931472, %v1453_v25  ;;  %1460 = vlog2.f32 %v960_v26 }
 0x26d   :  { %v1038_v60 = vsub.f32 %v1927_v7, %v988_v56 }
 0x26e   :  { %v1455_v34 = vpop.eup %1454  ;;  %v1039_v63 = vsub.f32 %v1938_v22, %v990_v33 }
 0x26f   :  { %v1457_v37 = vpop.eup %1456  ;;  %1070 = vst [vmem:[%s2085_s3 + $0x68] sm:$0xff] %v1038_v60  ;;  %v1020_v9 = vmul.f32 0.6931472, %v1455_v34 }
 0x270   :  { %1071 = vst [vmem:[%s2085_s3 + $0x70] sm:$0xff] %v1039_v63  ;;  %v1022_v36 = vmul.f32 0.6931472, %v1457_v37 }
 0x271   :  { %v1054_v45 = vsub.f32 %v1935_v24, %v1020_v9 }
 0x272   :  { %v1459_v48 = vpop.eup %1458  ;;  %v1055_v41 = vsub.f32 %v1943_v38, %v1022_v36 }
 0x273   :  { %1086 = vst [vmem:[%s2085_s3 + $0xe8] sm:$0xff] %v1054_v45  ;;  %v992_v7 = vmul.f32 0.6931472, %v1459_v48 }
 0x274   :  { %1087 = vst [vmem:[%s2085_s3 + $0xf0] sm:$0xff] %v1055_v41 }
 0x275   :  { %v1040_v22 = vsub.f32 %v1946_v31, %v992_v7 }
 0x276   :  { %v1461_v40 = vpop.eup %1460 }
 0x277   :  { %1072 = vst [vmem:[%s2085_s3 + $0x78] sm:$0xff] %v1040_v22  ;;  %v1024_v24 = vmul.f32 0.6931472, %v1461_v40 }
 0x279   :  { %v1056_v43 = vsub.f32 %v1951_v47, %v1024_v24 }
 0x27b   :  { %1088 = vst [vmem:[%s2085_s3 + $0xf8] sm:$0xff] %v1056_v43 }

// kernel: gcn_forward.2
= control target key start
LH: loop header
LB: loop body
LE: loop exit
PB: predicated region body
PF: predicated region fallthrough
CT: control target
= control target key end

     0   :  { %s2253_s2 = inlined_call_operand.vmem [shape: bf16[128,128], index: 2, kind: input, shape index: {}]   ;;  %s2254_s1 = inlined_call_operand.vmem [shape: bf16[256,128], index: 1, kind: input, shape index: {}]   ;;  %s2255_s0 = inlined_call_operand.vmem [shape: bf16[256,256], index: 0, kind: input, shape index: {}]   ;;  %s2256_s4 = inlined_call_operand.vmem [shape: bf16[128,128], index: 4, kind: input, shape index: {}]   ;;  %s2257_s3 = inlined_call_operand.vmem [shape: f32[1,128], index: 3, kind: input, shape index: {}]   ;;  %s2258_s5 = inlined_call_operand.vmem [shape: bf16[256,128], index: 5, kind: output, shape index: {}]  }
   0x1   :  { %v1866_v0 = vld [vmem:[%s2253_s2] sm:$0xff]   ;;  %v1867_v1 = vld [vmem:[%s2253_s2 + $0x8] sm:$0xff]   ;;  %v1868_v2 = vld [vmem:[%s2253_s2 + $0x10] sm:$0xff]  }
   0x2   :  { %1770 = vmatprep.subr.bf16.mxu0 %v1866_v0  ;;  %v1869_v3 = vld [vmem:[%s2253_s2 + $0x18] sm:$0xff]   ;;  %v1874_v4 = vld [vmem:[%s2254_s1] sm:$0xff]   ;;  %v1871_v6 = vld [vmem:[%s2253_s2 + $0x28] sm:$0xff]  }
   0x3   :  { %1771 = vmatpush3.bf16.msra.mxu0 %v1866_v0  ;;  %1786 = vmatprep.mubr.bf16.mxu0 %v1874_v4  ;;  %v1870_v5 = vld [vmem:[%s2253_s2 + $0x20] sm:$0xff]   ;;  %v1872_v7 = vld [vmem:[%s2253_s2 + $0x30] sm:$0xff]   ;;  %v1873_v8 = vld [vmem:[%s2253_s2 + $0x38] sm:$0xff]  }
   0x4   :  { %1772 = vmatprep.subr.bf16.mxu0 %v1867_v1  ;;  %v1875_v9 = vld [vmem:[%s2254_s1 + $0x8] sm:$0xff]   ;;  %v1876_v10 = vld [vmem:[%s2254_s1 + $0x10] sm:$0xff]   ;;  %v1877_v11 = vld [vmem:[%s2254_s1 + $0x18] sm:$0xff]  }
   0x5   :  { %v1878_v12 = vld [vmem:[%s2254_s1 + $0x20] sm:$0xff]   ;;  %v1879_v13 = vld [vmem:[%s2254_s1 + $0x28] sm:$0xff]   ;;  %v1880_v14 = vld [vmem:[%s2254_s1 + $0x30] sm:$0xff]  }
   0x6   :  { %v1881_v15 = vld [vmem:[%s2254_s1 + $0x38] sm:$0xff]   ;;  %v1882_v16 = vld [vmem:[%s2254_s1 + $0x40] sm:$0xff]   ;;  %v1883_v17 = vld [vmem:[%s2254_s1 + $0x48] sm:$0xff]  }
   0x7   :  { %1773 = vmatpush3.bf16.msra.mxu0 %v1867_v1  ;;  %v1884_v18 = vld [vmem:[%s2254_s1 + $0x50] sm:$0xff]   ;;  %v1885_v19 = vld [vmem:[%s2254_s1 + $0x58] sm:$0xff]   ;;  %v1886_v20 = vld [vmem:[%s2254_s1 + $0x60] sm:$0xff]  }
   0x8   :  { %1774 = vmatprep.subr.bf16.mxu0 %v1868_v2  ;;  %v1887_v21 = vld [vmem:[%s2254_s1 + $0x68] sm:$0xff]   ;;  %v1888_v22 = vld [vmem:[%s2254_s1 + $0x70] sm:$0xff]   ;;  %v1889_v23 = vld [vmem:[%s2254_s1 + $0x78] sm:$0xff]  }
   0x9   :  { %v1892_v24 = vld [vmem:[%s2255_s0 + $0x4] ss:$8 sps:$4 sm:$0xff]  }
   0xa   :  { %682 = vmatprep.mubr.bf16.mxu1 %v1892_v24  ;;  %v1910_v24 = vld [vmem:[%s2255_s0 + $0x60] ss:$8 sps:$4 sm:$0xff]  }
   0xb   :  { %1775 = vmatpush3.bf16.msra.mxu0 %v1868_v2 }
   0xc   :  { %1776 = vmatprep.subr.bf16.mxu0 %v1869_v3 }
   0xf   :  { %1777 = vmatpush3.bf16.msra.mxu0 %v1869_v3 }
  0x10   :  { %1778 = vmatprep.subr.bf16.mxu0 %v1870_v5 }
  0x13   :  { %1779 = vmatpush3.bf16.msra.mxu0 %v1870_v5 }
  0x14   :  { %1780 = vmatprep.subr.bf16.mxu0 %v1871_v6 }
  0x17   :  { %1781 = vmatpush3.bf16.msra.mxu0 %v1871_v6 }
  0x18   :  { %1782 = vmatprep.subr.bf16.mxu0 %v1872_v7 }
  0x1b   :  { %1783 = vmatpush3.bf16.msra.mxu0 %v1872_v7 }
  0x1c   :  { %1784 = vmatprep.subr.bf16.mxu0 %v1873_v8 }
  0x1f   :  { %1785 = vmatpush3.bf16.msra.mxu0 %v1873_v8 }
  0x22   :  { %1787 = vmatmul.mubr.bf16.vlgmr.msra.gmra.mrb[0].mxu0 %v1875_v9  ;;  %v1938_v9 = vld [vmem:[%s2256_s4] sm:$0xff]  }
  0x23   :  { %1790 = vmatprep.mubr.bf16.mxu0 %v1876_v10  ;;  %v1890_v10 = vld [vmem:[%s2255_s0] ss:$8 sps:$4 sm:$0xff]   ;;  %1818 = vmatprep.subr.bf16.mxu0 %v1938_v9 }
  0x24   :  { %1819 = vmatpush3.bf16.msra.mxu0 %v1938_v9 }
  0x2a   :  { %1791 = vmatmul.mubr.bf16.gmra.mrb[4].mxu0 %v1877_v11  ;;  %v1939_v11 = vld [vmem:[%s2256_s4 + $0x8] sm:$0xff]  }
  0x2b   :  { %1794 = vmatprep.mubr.bf16.mxu0 %v1878_v12  ;;  %v1893_v12 = vld [vmem:[%s2255_s0 + $0x14] ss:$8 sps:$4 sm:$0xff]   ;;  %1820 = vmatprep.subr.bf16.mxu0 %v1939_v11 }
  0x2c   :  { %1821 = vmatpush3.bf16.msra.mxu0 %v1939_v11 }
  0x32   :  { %1795 = vmatmul.mubr.bf16.gmra.mrb[8].mxu0 %v1879_v13  ;;  %v1940_v13 = vld [vmem:[%s2256_s4 + $0x10] sm:$0xff]  }
  0x33   :  { %1798 = vmatprep.mubr.bf16.mxu0 %v1880_v14  ;;  %1822 = vmatprep.subr.bf16.mxu0 %v1940_v13  ;;  %v1895_v14 = vld [vmem:[%s2255_s0 + $0x10] ss:$8 sps:$4 sm:$0xff]  }
  0x34   :  { %1823 = vmatpush3.bf16.msra.mxu0 %v1940_v13 }
  0x3a   :  { %1799 = vmatmul.mubr.bf16.gmra.mrb[12].mxu0 %v1881_v15  ;;  %v1896_v15 = vld [vmem:[%s2255_s0 + $0x24] ss:$8 sps:$4 sm:$0xff]  }
  0x3b   :  { %1802 = vmatprep.mubr.bf16.mxu0 %v1882_v16  ;;  %v1898_v16 = vld [vmem:[%s2255_s0 + $0x20] ss:$8 sps:$4 sm:$0xff]  }
  0x42   :  { %1803 = vmatmul.mubr.bf16.gmra.mrb[16].mxu0 %v1883_v17  ;;  %v1899_v17 = vld [vmem:[%s2255_s0 + $0x34] ss:$8 sps:$4 sm:$0xff]  }
  0x43   :  { %1806 = vmatprep.mubr.bf16.mxu0 %v1884_v18  ;;  %v1901_v18 = vld [vmem:[%s2255_s0 + $0x30] ss:$8 sps:$4 sm:$0xff]  }
  0x4a   :  { %1807 = vmatmul.mubr.bf16.gmra.mrb[20].mxu0 %v1885_v19  ;;  %v1902_v19 = vld [vmem:[%s2255_s0 + $0x44] ss:$8 sps:$4 sm:$0xff]  }
  0x4b   :  { %1810 = vmatprep.mubr.bf16.mxu0 %v1886_v20  ;;  %v1904_v20 = vld [vmem:[%s2255_s0 + $0x40] ss:$8 sps:$4 sm:$0xff]  }
  0x52   :  { %1811 = vmatmul.mubr.bf16.gmra.mrb[24].mxu0 %v1887_v21  ;;  %v1905_v21 = vld [vmem:[%s2255_s0 + $0x54] ss:$8 sps:$4 sm:$0xff]  }
  0x53   :  { %1814 = vmatprep.mubr.bf16.mxu0 %v1888_v22  ;;  %v1907_v22 = vld [vmem:[%s2255_s0 + $0x50] ss:$8 sps:$4 sm:$0xff]  }
  0x5a   :  { %1815 = vmatmul.mubr.bf16.gmra.mrb[28].mxu0 %v1889_v23  ;;  %v1908_v23 = vld [vmem:[%s2255_s0 + $0x64] ss:$8 sps:$4 sm:$0xff]  }
  0xf5   :  { %v1788_v25 = vpop.f32.mrb[0].mxu0 }
  0xf6   :  { %v283_v26 = vpop.f32.mrb[1].mxu0 }
  0xf7   :  { %v1789_v27 = vpop.f32.mrb[2].mxu0 }
  0xf8   :  { %v475_v28 = vpack.c.bf16 %v1789_v27, %v1788_v25  ;;  %v286_v29 = vpop.f32.mrb[3].mxu0  ;;  %v1911_v25 = vld [vmem:[%s2255_s0 + $0x74] ss:$8 sps:$4 sm:$0xff]   ;;  %v1914_v27 = vld [vmem:[%s2255_s0 + $0x84] ss:$8 sps:$4 sm:$0xff]  }
  0xf9   :  { %v474_v30 = vpack.c.bf16 %v286_v29, %v283_v26  ;;  %v1913_v26 = vld [vmem:[%s2255_s0 + $0x70] ss:$8 sps:$4 sm:$0xff]   ;;  %v1917_v29 = vld [vmem:[%s2255_s0 + $0x94] ss:$8 sps:$4 sm:$0xff]  }
  0xfd   :  { %v1792_v31 = vpop.f32.mrb[4].mxu0 }
  0xfe   :  { %v299_v32 = vpop.f32.mrb[5].mxu0 }
  0xff   :  { %v1793_v33 = vpop.f32.mrb[6].mxu0 }
 0x100   :  { %v477_v34 = vpack.c.bf16 %v1793_v33, %v1792_v31  ;;  %v302_v35 = vpop.f32.mrb[7].mxu0  ;;  %v1920_v31 = vld [vmem:[%s2255_s0 + $0xa4] ss:$8 sps:$4 sm:$0xff]   ;;  %v1923_v33 = vld [vmem:[%s2255_s0 + $0xb4] ss:$8 sps:$4 sm:$0xff]  }
 0x101   :  { %v476_v36 = vpack.c.bf16 %v302_v35, %v299_v32  ;;  %v1922_v32 = vld [vmem:[%s2255_s0 + $0xa0] ss:$8 sps:$4 sm:$0xff]   ;;  %v1925_v35 = vld [vmem:[%s2255_s0 + $0xb0] ss:$8 sps:$4 sm:$0xff]  }
 0x105   :  { %v1796_v37 = vpop.f32.mrb[8].mxu0 }
 0x106   :  { %v315_v38 = vpop.f32.mrb[9].mxu0 }
 0x107   :  { %v1797_v39 = vpop.f32.mrb[10].mxu0 }
 0x108   :  { %v479_v40 = vpack.c.bf16 %v1797_v39, %v1796_v37  ;;  %v318_v41 = vpop.f32.mrb[11].mxu0  ;;  %v1942_v37 = vld [vmem:[%s2256_s4 + $0x20] sm:$0xff]  }
 0x109   :  { %v478_v42 = vpack.c.bf16 %v318_v41, %v315_v38  ;;  %v1943_v38 = vld [vmem:[%s2256_s4 + $0x28] sm:$0xff]   ;;  %v1944_v41 = vld [vmem:[%s2256_s4 + $0x30] sm:$0xff]  }
 0x10a   :  { %v1928_v39 = vld [vmem:[%s2255_s0 + $0xc0] ss:$8 sps:$4 sm:$0xff]  }
 0x10d   :  { %v1800_v43 = vpop.f32.mrb[12].mxu0 }
 0x10e   :  { %v331_v44 = vpop.f32.mrb[13].mxu0 }
 0x10f   :  { %v1801_v45 = vpop.f32.mrb[14].mxu0 }
 0x110   :  { %v481_v46 = vpack.c.bf16 %v1801_v45, %v1800_v43  ;;  %v334_v47 = vpop.f32.mrb[15].mxu0  ;;  %v1931_v43 = vld [vmem:[%s2255_s0 + $0xd0] ss:$8 sps:$4 sm:$0xff]   ;;  %v1934_v45 = vld [vmem:[%s2255_s0 + $0xe0] ss:$8 sps:$4 sm:$0xff]  }
 0x111   :  { %v480_v48 = vpack.c.bf16 %v334_v47, %v331_v44  ;;  %v1932_v44 = vld [vmem:[%s2255_s0 + $0xe4] ss:$8 sps:$4 sm:$0xff]   ;;  %v1937_v47 = vld [vmem:[%s2255_s0 + $0xf0] ss:$8 sps:$4 sm:$0xff]  }
 0x115   :  { %v1804_v49 = vpop.f32.mrb[16].mxu0 }
 0x116   :  { %v347_v50 = vpop.f32.mrb[17].mxu0 }
 0x117   :  { %v1805_v51 = vpop.f32.mrb[18].mxu0 }
 0x118   :  { %v483_v52 = vpack.c.bf16 %v1805_v51, %v1804_v49  ;;  %v350_v53 = vpop.f32.mrb[19].mxu0 }
 0x119   :  { %v482_v54 = vpack.c.bf16 %v350_v53, %v347_v50  ;;  %v2171_v50 = vld [vmem:[%s2257_s3] ss:$0 sm:$0xff] }
 0x11b   :  { %1634 = vmatprep.subr.bf16.mxu1 %v482_v54 }
 0x11c   :  { %1635 = vmatpush3.bf16.msra.mxu1 %v474_v30  ;;  %v1919_v30 = vld [vmem:[%s2255_s0 + $0x90] ss:$8 sps:$4 sm:$0xff]  }
 0x11d   :  { %v1808_v55 = vpop.f32.mrb[20].mxu0  ;;  %1636 = vmatprep.subr.bf16.mxu1 %v483_v52 }
 0x11e   :  { %v363_v56 = vpop.f32.mrb[21].mxu0 }
 0x11f   :  { %v1809_v57 = vpop.f32.mrb[22].mxu0 }
 0x120   :  { %v485_v58 = vpack.c.bf16 %v1809_v57, %v1808_v55  ;;  %v366_v59 = vpop.f32.mrb[23].mxu0  ;;  %1637 = vmatpush3.bf16.msra.mxu1 %v475_v28  ;;  %v1916_v28 = vld [vmem:[%s2255_s0 + $0x80] ss:$8 sps:$4 sm:$0xff]  }
 0x121   :  { %v484_v60 = vpack.c.bf16 %v366_v59, %v363_v56 }
 0x123   :  { %1638 = vmatprep.subr.bf16.mxu1 %v484_v60 }
 0x124   :  { %1639 = vmatpush3.bf16.msra.mxu1 %v476_v36  ;;  %v1926_v36 = vld [vmem:[%s2255_s0 + $0xc4] ss:$8 sps:$4 sm:$0xff]  }
 0x125   :  { %v1812_v61 = vpop.f32.mrb[24].mxu0  ;;  %1640 = vmatprep.subr.bf16.mxu1 %v485_v58 }
 0x126   :  { %v379_v62 = vpop.f32.mrb[25].mxu0 }
 0x127   :  { %v1813_v63 = vpop.f32.mrb[26].mxu0 }
 0x128   :  { %v487_v0 = vpack.c.bf16 %v1813_v63, %v1812_v61  ;;  %v382_v1 = vpop.f32.mrb[27].mxu0  ;;  %1641 = vmatpush3.bf16.msra.mxu1 %v477_v34  ;;  %v1941_v34 = vld [vmem:[%s2256_s4 + $0x18] sm:$0xff]  }
 0x129   :  { %v486_v2 = vpack.c.bf16 %v382_v1, %v379_v62  ;;  %1824 = vmatprep.subr.bf16.mxu0 %v1941_v34 }
 0x12a   :  { %1825 = vmatpush3.bf16.msra.mxu0 %v1941_v34 }
 0x12b   :  { %1642 = vmatprep.subr.bf16.mxu1 %v486_v2  ;;  %1826 = vmatprep.subr.bf16.mxu0 %v1942_v37 }
 0x12c   :  { %1643 = vmatpush3.bf16.msra.mxu1 %v478_v42  ;;  %v1945_v42 = vld [vmem:[%s2256_s4 + $0x38] sm:$0xff]  }
 0x12d   :  { %v1816_v3 = vpop.f32.mrb[28].mxu0  ;;  %1644 = vmatprep.subr.bf16.mxu1 %v487_v0 }
 0x12e   :  { %v395_v4 = vpop.f32.mrb[29].mxu0  ;;  %1827 = vmatpush3.bf16.msra.mxu0 %v1942_v37 }
 0x12f   :  { %v1817_v5 = vpop.f32.mrb[30].mxu0  ;;  %1828 = vmatprep.subr.bf16.mxu0 %v1943_v38 }
 0x130   :  { %v489_v6 = vpack.c.bf16 %v1817_v5, %v1816_v3  ;;  %v398_v7 = vpop.f32.mrb[31].mxu0  ;;  %1645 = vmatpush3.bf16.msra.mxu1 %v479_v40  ;;  %v1929_v40 = vld [vmem:[%s2255_s0 + $0xd4] ss:$8 sps:$4 sm:$0xff]  }
 0x131   :  { %v488_v8 = vpack.c.bf16 %v398_v7, %v395_v4 }
 0x132   :  { %1829 = vmatpush3.bf16.msra.mxu0 %v1943_v38 }
 0x133   :  { %1646 = vmatprep.subr.bf16.mxu1 %v488_v8  ;;  %1830 = vmatprep.subr.bf16.mxu0 %v1944_v41 }
 0x134   :  { %1647 = vmatpush3.bf16.msra.mxu1 %v480_v48 }
 0x135   :  { %1648 = vmatprep.subr.bf16.mxu1 %v489_v6 }
 0x136   :  { %1831 = vmatpush3.bf16.msra.mxu0 %v1944_v41 }
 0x137   :  { %1832 = vmatprep.subr.bf16.mxu0 %v1945_v42 }
 0x138   :  { %1649 = vmatpush3.bf16.msra.mxu1 %v481_v46  ;;  %v1935_v46 = vld [vmem:[%s2255_s0 + $0xf4] ss:$8 sps:$4 sm:$0xff]  }
 0x13a   :  { %1833 = vmatpush3.bf16.msra.mxu0 %v1945_v42 }
 0x13b   :  { %683 = vmatmul.mubr.bf16.vlgmr.msra.gmra.mrb[0].mxu1 %v1890_v10 }
 0x13c   :  { %690 = vmatprep.mubr.bf16.mxu1 %v1893_v12 }
 0x143   :  { %691 = vmatmul.mubr.bf16.gmra.mrb[4].mxu1 %v1895_v14 }
 0x144   :  { %698 = vmatprep.mubr.bf16.mxu1 %v1896_v15 }
 0x14b   :  { %699 = vmatmul.mubr.bf16.gmra.mrb[8].mxu1 %v1898_v16 }
 0x14c   :  { %706 = vmatprep.mubr.bf16.mxu1 %v1899_v17 }
 0x153   :  { %707 = vmatmul.mubr.bf16.gmra.mrb[12].mxu1 %v1901_v18 }
 0x154   :  { %714 = vmatprep.mubr.bf16.mxu1 %v1902_v19 }
 0x15b   :  { %715 = vmatmul.mubr.bf16.gmra.mrb[16].mxu1 %v1904_v20 }
 0x15c   :  { %722 = vmatprep.mubr.bf16.mxu1 %v1905_v21 }
 0x163   :  { %723 = vmatmul.mubr.bf16.gmra.mrb[20].mxu1 %v1907_v22 }
 0x164   :  { %730 = vmatprep.mubr.bf16.mxu1 %v1908_v23 }
 0x16b   :  { %731 = vmatmul.mubr.bf16.gmra.mrb[24].mxu1 %v1910_v24 }
 0x16c   :  { %738 = vmatprep.mubr.bf16.mxu1 %v1911_v25 }
 0x173   :  { %739 = vmatmul.mubr.bf16.gmra.mrb[28].mxu1 %v1913_v26 }
 0x174   :  { %746 = vmatprep.mubr.bf16.mxu1 %v1914_v27 }
 0x17b   :  { %747 = vmatmul.mubr.bf16.gmra.mrb[32].mxu1 %v1916_v28 }
 0x17c   :  { %754 = vmatprep.mubr.bf16.mxu1 %v1917_v29 }
 0x183   :  { %755 = vmatmul.mubr.bf16.gmra.mrb[36].mxu1 %v1919_v30 }
 0x184   :  { %762 = vmatprep.mubr.bf16.mxu1 %v1920_v31 }
 0x18b   :  { %763 = vmatmul.mubr.bf16.gmra.mrb[40].mxu1 %v1922_v32 }
 0x18c   :  { %770 = vmatprep.mubr.bf16.mxu1 %v1923_v33 }
 0x193   :  { %771 = vmatmul.mubr.bf16.gmra.mrb[44].mxu1 %v1925_v35 }
 0x194   :  { %778 = vmatprep.mubr.bf16.mxu1 %v1926_v36 }
 0x19b   :  { %779 = vmatmul.mubr.bf16.gmra.mrb[48].mxu1 %v1928_v39 }
 0x19c   :  { %786 = vmatprep.mubr.bf16.mxu1 %v1929_v40 }
 0x1a3   :  { %787 = vmatmul.mubr.bf16.gmra.mrb[52].mxu1 %v1931_v43 }
 0x1a4   :  { %794 = vmatprep.mubr.bf16.mxu1 %v1932_v44 }
 0x1ab   :  { %795 = vmatmul.mubr.bf16.gmra.mrb[56].mxu1 %v1934_v45 }
 0x1ac   :  { %802 = vmatprep.mubr.bf16.mxu1 %v1935_v46 }
 0x1b3   :  { %803 = vmatmul.mubr.bf16.gmra.mrb[60].mxu1 %v1937_v47 }
 0x20e   :  { %v1650_v48 = vpop.f32.mrb[0].mxu1 }
 0x20f   :  { %v1651_v49 = vpop.f32.mrb[1].mxu1 }
 0x210   :  { %v1652_v51 = vadd.f32 %v1651_v49, %v1650_v48  ;;  %v1653_v52 = vpop.f32.mrb[2].mxu1 }
 0x211   :  { %v1654_v53 = vpop.f32.mrb[3].mxu1 }
 0x212   :  { %v917_v54 = vadd.f32 %v1652_v51, %v2171_v50  ;;  %v1655_v55 = vadd.f32 %v1654_v53, %v1653_v52 }
 0x214   :  { %v918_v56 = vadd.f32 %v1655_v55, %v2171_v50  ;;  %v949_v57 = vmax.f32 %v917_v54, 0.0 }
 0x216   :  { %v950_v58 = vmax.f32 %v918_v56, 0.0  ;;  %v1656_v59 = vpop.f32.mrb[4].mxu1 }
 0x217   :  { %v1657_v60 = vpop.f32.mrb[5].mxu1 }
 0x218   :  { %v1658_v61 = vadd.f32 %v1657_v60, %v1656_v59  ;;  %v1659_v62 = vpop.f32.mrb[6].mxu1  ;;  %v981_v63 = vpack.c.bf16 %v950_v58, %v949_v57 }
 0x219   :  { %v1660_v0 = vpop.f32.mrb[7].mxu1 }
 0x21a   :  { %v919_v1 = vadd.f32 %v1658_v61, %v2171_v50  ;;  %v1661_v2 = vadd.f32 %v1660_v0, %v1659_v62  ;;  %1834 = vmatprep.mubr.bf16.mxu0 %v981_v63 }
 0x21c   :  { %v920_v3 = vadd.f32 %v1661_v2, %v2171_v50  ;;  %v951_v4 = vmax.f32 %v919_v1, 0.0 }
 0x21e   :  { %v952_v5 = vmax.f32 %v920_v3, 0.0  ;;  %v1662_v6 = vpop.f32.mrb[8].mxu1 }
 0x21f   :  { %v1663_v7 = vpop.f32.mrb[9].mxu1 }
 0x220   :  { %v982_v8 = vpack.c.bf16 %v952_v5, %v951_v4  ;;  %v1664_v9 = vadd.f32 %v1663_v7, %v1662_v6  ;;  %v1665_v10 = vpop.f32.mrb[10].mxu1 }
 0x221   :  { %v1666_v11 = vpop.f32.mrb[11].mxu1 }
 0x222   :  { %v921_v12 = vadd.f32 %v1664_v9, %v2171_v50  ;;  %v1667_v13 = vadd.f32 %v1666_v11, %v1665_v10  ;;  %1835 = vmatmul.mubr.bf16.vlgmr.msra.gmra.mrb[32].mxu0 %v982_v8 }
 0x224   :  { %v922_v14 = vadd.f32 %v1667_v13, %v2171_v50  ;;  %v953_v15 = vmax.f32 %v921_v12, 0.0 }
 0x226   :  { %v954_v16 = vmax.f32 %v922_v14, 0.0  ;;  %v1668_v17 = vpop.f32.mrb[12].mxu1 }
 0x227   :  { %v1669_v18 = vpop.f32.mrb[13].mxu1 }
 0x228   :  { %v1670_v19 = vadd.f32 %v1669_v18, %v1668_v17  ;;  %v1671_v20 = vpop.f32.mrb[14].mxu1  ;;  %v983_v21 = vpack.c.bf16 %v954_v16, %v953_v15 }
 0x229   :  { %v1672_v22 = vpop.f32.mrb[15].mxu1 }
 0x22a   :  { %v923_v23 = vadd.f32 %v1670_v19, %v2171_v50  ;;  %v1673_v24 = vadd.f32 %v1672_v22, %v1671_v20  ;;  %1838 = vmatprep.mubr.bf16.mxu0 %v983_v21 }
 0x22c   :  { %v924_v25 = vadd.f32 %v1673_v24, %v2171_v50  ;;  %v955_v26 = vmax.f32 %v923_v23, 0.0 }
 0x22e   :  { %v956_v27 = vmax.f32 %v924_v25, 0.0  ;;  %v1674_v28 = vpop.f32.mrb[16].mxu1 }
 0x22f   :  { %v1675_v29 = vpop.f32.mrb[17].mxu1 }
 0x230   :  { %v1676_v30 = vadd.f32 %v1675_v29, %v1674_v28  ;;  %v1677_v31 = vpop.f32.mrb[18].mxu1  ;;  %v984_v32 = vpack.c.bf16 %v956_v27, %v955_v26 }
 0x231   :  { %v1678_v33 = vpop.f32.mrb[19].mxu1 }
 0x232   :  { %v925_v34 = vadd.f32 %v1676_v30, %v2171_v50  ;;  %v1679_v35 = vadd.f32 %v1678_v33, %v1677_v31  ;;  %1839 = vmatmul.mubr.bf16.gmra.mrb[36].mxu0 %v984_v32 }
 0x234   :  { %v926_v36 = vadd.f32 %v1679_v35, %v2171_v50  ;;  %v957_v37 = vmax.f32 %v925_v34, 0.0 }
 0x236   :  { %v958_v38 = vmax.f32 %v926_v36, 0.0  ;;  %v1680_v39 = vpop.f32.mrb[20].mxu1 }
 0x237   :  { %v1681_v40 = vpop.f32.mrb[21].mxu1 }
 0x238   :  { %v1682_v41 = vadd.f32 %v1681_v40, %v1680_v39  ;;  %v1683_v42 = vpop.f32.mrb[22].mxu1  ;;  %v985_v43 = vpack.c.bf16 %v958_v38, %v957_v37 }
 0x239   :  { %v1684_v44 = vpop.f32.mrb[23].mxu1 }
 0x23a   :  { %v927_v45 = vadd.f32 %v1682_v41, %v2171_v50  ;;  %v1685_v46 = vadd.f32 %v1684_v44, %v1683_v42  ;;  %1842 = vmatprep.mubr.bf16.mxu0 %v985_v43 }
 0x23c   :  { %v928_v47 = vadd.f32 %v1685_v46, %v2171_v50  ;;  %v959_v48 = vmax.f32 %v927_v45, 0.0 }
 0x23e   :  { %v960_v49 = vmax.f32 %v928_v47, 0.0  ;;  %v1686_v51 = vpop.f32.mrb[24].mxu1 }
 0x23f   :  { %v1687_v52 = vpop.f32.mrb[25].mxu1 }
 0x240   :  { %v1688_v53 = vadd.f32 %v1687_v52, %v1686_v51  ;;  %v1689_v54 = vpop.f32.mrb[26].mxu1  ;;  %v986_v55 = vpack.c.bf16 %v960_v49, %v959_v48 }
 0x241   :  { %v1690_v56 = vpop.f32.mrb[27].mxu1 }
 0x242   :  { %v929_v57 = vadd.f32 %v1688_v53, %v2171_v50  ;;  %v1691_v58 = vadd.f32 %v1690_v56, %v1689_v54  ;;  %1843 = vmatmul.mubr.bf16.gmra.mrb[40].mxu0 %v986_v55 }
 0x244   :  { %v930_v59 = vadd.f32 %v1691_v58, %v2171_v50  ;;  %v961_v60 = vmax.f32 %v929_v57, 0.0 }
 0x246   :  { %v962_v61 = vmax.f32 %v930_v59, 0.0  ;;  %v1692_v62 = vpop.f32.mrb[28].mxu1 }
 0x247   :  { %v1693_v63 = vpop.f32.mrb[29].mxu1 }
 0x248   :  { %v1694_v0 = vadd.f32 %v1693_v63, %v1692_v62  ;;  %v1695_v1 = vpop.f32.mrb[30].mxu1  ;;  %v987_v2 = vpack.c.bf16 %v962_v61, %v961_v60 }
 0x249   :  { %v1696_v3 = vpop.f32.mrb[31].mxu1 }
 0x24a   :  { %v931_v4 = vadd.f32 %v1694_v0, %v2171_v50  ;;  %v1697_v5 = vadd.f32 %v1696_v3, %v1695_v1  ;;  %1846 = vmatprep.mubr.bf16.mxu0 %v987_v2 }
 0x24c   :  { %v932_v6 = vadd.f32 %v1697_v5, %v2171_v50  ;;  %v963_v7 = vmax.f32 %v931_v4, 0.0 }
 0x24e   :  { %v964_v8 = vmax.f32 %v932_v6, 0.0  ;;  %v1698_v9 = vpop.f32.mrb[32].mxu1 }
 0x24f   :  { %v1699_v10 = vpop.f32.mrb[33].mxu1 }
 0x250   :  { %v1700_v11 = vadd.f32 %v1699_v10, %v1698_v9  ;;  %v1701_v12 = vpop.f32.mrb[34].mxu1  ;;  %v988_v13 = vpack.c.bf16 %v964_v8, %v963_v7 }
 0x251   :  { %v1702_v14 = vpop.f32.mrb[35].mxu1 }
 0x252   :  { %v933_v15 = vadd.f32 %v1700_v11, %v2171_v50  ;;  %v1703_v16 = vadd.f32 %v1702_v14, %v1701_v12  ;;  %1847 = vmatmul.mubr.bf16.gmra.mrb[44].mxu0 %v988_v13 }
 0x254   :  { %v934_v17 = vadd.f32 %v1703_v16, %v2171_v50  ;;  %v965_v18 = vmax.f32 %v933_v15, 0.0 }
 0x256   :  { %v966_v19 = vmax.f32 %v934_v17, 0.0  ;;  %v1704_v20 = vpop.f32.mrb[36].mxu1 }
 0x257   :  { %v1705_v21 = vpop.f32.mrb[37].mxu1 }
 0x258   :  { %v1706_v22 = vadd.f32 %v1705_v21, %v1704_v20  ;;  %v1707_v23 = vpop.f32.mrb[38].mxu1  ;;  %v989_v24 = vpack.c.bf16 %v966_v19, %v965_v18 }
 0x259   :  { %v1708_v25 = vpop.f32.mrb[39].mxu1 }
 0x25a   :  { %v935_v26 = vadd.f32 %v1706_v22, %v2171_v50  ;;  %v1709_v27 = vadd.f32 %v1708_v25, %v1707_v23  ;;  %1850 = vmatprep.mubr.bf16.mxu0 %v989_v24 }
 0x25c   :  { %v936_v28 = vadd.f32 %v1709_v27, %v2171_v50  ;;  %v967_v29 = vmax.f32 %v935_v26, 0.0 }
 0x25e   :  { %v968_v30 = vmax.f32 %v936_v28, 0.0  ;;  %v1710_v31 = vpop.f32.mrb[40].mxu1 }
 0x25f   :  { %v1711_v32 = vpop.f32.mrb[41].mxu1 }
 0x260   :  { %v1712_v33 = vadd.f32 %v1711_v32, %v1710_v31  ;;  %v1713_v34 = vpop.f32.mrb[42].mxu1  ;;  %v990_v35 = vpack.c.bf16 %v968_v30, %v967_v29 }
 0x261   :  { %v1714_v36 = vpop.f32.mrb[43].mxu1 }
 0x262   :  { %v937_v37 = vadd.f32 %v1712_v33, %v2171_v50  ;;  %v1715_v38 = vadd.f32 %v1714_v36, %v1713_v34  ;;  %1851 = vmatmul.mubr.bf16.gmra.mrb[48].mxu0 %v990_v35 }
 0x264   :  { %v938_v39 = vadd.f32 %v1715_v38, %v2171_v50  ;;  %v969_v40 = vmax.f32 %v937_v37, 0.0 }
 0x266   :  { %v970_v41 = vmax.f32 %v938_v39, 0.0  ;;  %v1716_v42 = vpop.f32.mrb[44].mxu1 }
 0x267   :  { %v1717_v43 = vpop.f32.mrb[45].mxu1 }
 0x268   :  { %v1718_v44 = vadd.f32 %v1717_v43, %v1716_v42  ;;  %v1719_v45 = vpop.f32.mrb[46].mxu1  ;;  %v991_v46 = vpack.c.bf16 %v970_v41, %v969_v40 }
 0x269   :  { %v1720_v47 = vpop.f32.mrb[47].mxu1 }
 0x26a   :  { %v939_v48 = vadd.f32 %v1718_v44, %v2171_v50  ;;  %v1721_v49 = vadd.f32 %v1720_v47, %v1719_v45  ;;  %1854 = vmatprep.mubr.bf16.mxu0 %v991_v46 }
 0x26c   :  { %v940_v51 = vadd.f32 %v1721_v49, %v2171_v50  ;;  %v971_v52 = vmax.f32 %v939_v48, 0.0 }
 0x26e   :  { %v972_v53 = vmax.f32 %v940_v51, 0.0  ;;  %v1722_v54 = vpop.f32.mrb[48].mxu1 }
 0x26f   :  { %v1723_v55 = vpop.f32.mrb[49].mxu1 }
 0x270   :  { %v1724_v56 = vadd.f32 %v1723_v55, %v1722_v54  ;;  %v1725_v57 = vpop.f32.mrb[50].mxu1  ;;  %v992_v58 = vpack.c.bf16 %v972_v53, %v971_v52 }
 0x271   :  { %v1726_v59 = vpop.f32.mrb[51].mxu1 }
 0x272   :  { %v941_v60 = vadd.f32 %v1724_v56, %v2171_v50  ;;  %v1727_v61 = vadd.f32 %v1726_v59, %v1725_v57  ;;  %1855 = vmatmul.mubr.bf16.gmra.mrb[52].mxu0 %v992_v58 }
 0x274   :  { %v942_v62 = vadd.f32 %v1727_v61, %v2171_v50  ;;  %v973_v63 = vmax.f32 %v941_v60, 0.0 }
 0x276   :  { %v974_v0 = vmax.f32 %v942_v62, 0.0  ;;  %v1728_v1 = vpop.f32.mrb[52].mxu1 }
 0x277   :  { %v1729_v2 = vpop.f32.mrb[53].mxu1 }
 0x278   :  { %v1730_v3 = vadd.f32 %v1729_v2, %v1728_v1  ;;  %v1731_v4 = vpop.f32.mrb[54].mxu1  ;;  %v993_v5 = vpack.c.bf16 %v974_v0, %v973_v63 }
 0x279   :  { %v1732_v6 = vpop.f32.mrb[55].mxu1 }
 0x27a   :  { %v943_v7 = vadd.f32 %v1730_v3, %v2171_v50  ;;  %v1733_v8 = vadd.f32 %v1732_v6, %v1731_v4  ;;  %1858 = vmatprep.mubr.bf16.mxu0 %v993_v5 }
 0x27c   :  { %v944_v9 = vadd.f32 %v1733_v8, %v2171_v50  ;;  %v975_v10 = vmax.f32 %v943_v7, 0.0 }
 0x27e   :  { %v976_v11 = vmax.f32 %v944_v9, 0.0  ;;  %v1734_v12 = vpop.f32.mrb[56].mxu1 }
 0x27f   :  { %v1735_v13 = vpop.f32.mrb[57].mxu1 }
 0x280   :  { %v1736_v14 = vadd.f32 %v1735_v13, %v1734_v12  ;;  %v1737_v15 = vpop.f32.mrb[58].mxu1  ;;  %v994_v16 = vpack.c.bf16 %v976_v11, %v975_v10 }
 0x281   :  { %v1738_v17 = vpop.f32.mrb[59].mxu1 }
 0x282   :  { %v945_v18 = vadd.f32 %v1736_v14, %v2171_v50  ;;  %v1739_v19 = vadd.f32 %v1738_v17, %v1737_v15  ;;  %1859 = vmatmul.mubr.bf16.gmra.mrb[56].mxu0 %v994_v16 }
 0x284   :  { %v946_v20 = vadd.f32 %v1739_v19, %v2171_v50  ;;  %v977_v21 = vmax.f32 %v945_v18, 0.0 }
 0x286   :  { %v978_v22 = vmax.f32 %v946_v20, 0.0  ;;  %v1740_v23 = vpop.f32.mrb[60].mxu1 }
 0x287   :  { %v1741_v24 = vpop.f32.mrb[61].mxu1 }
 0x288   :  { %v1742_v25 = vadd.f32 %v1741_v24, %v1740_v23  ;;  %v1743_v26 = vpop.f32.mrb[62].mxu1  ;;  %v995_v27 = vpack.c.bf16 %v978_v22, %v977_v21 }
 0x289   :  { %v1744_v28 = vpop.f32.mrb[63].mxu1 }
 0x28a   :  { %v947_v29 = vadd.f32 %v1742_v25, %v2171_v50  ;;  %v1745_v30 = vadd.f32 %v1744_v28, %v1743_v26  ;;  %1862 = vmatprep.mubr.bf16.mxu0 %v995_v27 }
 0x28c   :  { %v948_v31 = vadd.f32 %v1745_v30, %v2171_v50  ;;  %v979_v32 = vmax.f32 %v947_v29, 0.0 }
 0x28e   :  { %v980_v33 = vmax.f32 %v948_v31, 0.0 }
 0x290   :  { %v996_v34 = vpack.c.bf16 %v980_v33, %v979_v32 }
 0x292   :  { %1863 = vmatmul.mubr.bf16.gmra.mrb[60].mxu0 %v996_v34 }
 0x2f5   :  { %v1836_v35 = vpop.f32.mrb[32].mxu0 }
 0x2f6   :  { %v1095_v36 = vpop.f32.mrb[33].mxu0 }
 0x2f7   :  { %v1837_v37 = vpop.f32.mrb[34].mxu0 }
 0x2f8   :  { %v1523_v38 = vpack.c.bf16 %v1837_v37, %v1836_v35  ;;  %v1098_v39 = vpop.f32.mrb[35].mxu0 }
 0x2f9   :  { %v1518_v40 = vpack.c.bf16 %v1098_v39, %v1095_v36 }
 0x2fa   :  { %1595 = vst [vmem:[%s2258_s5 + $0x8] sm:$0xff] %v1523_v38  }
 0x2fb   :  { %1519 = vst [vmem:[%s2258_s5] sm:$0xff] %v1518_v40  }
 0x305   :  { %v1840_v41 = vpop.f32.mrb[36].mxu0 }
 0x306   :  { %v1111_v50 = vpop.f32.mrb[37].mxu0 }
 0x307   :  { %v1841_v42 = vpop.f32.mrb[38].mxu0 }
 0x308   :  { %v1533_v43 = vpack.c.bf16 %v1841_v42, %v1840_v41  ;;  %v1114_v44 = vpop.f32.mrb[39].mxu0 }
 0x309   :  { %v1528_v45 = vpack.c.bf16 %v1114_v44, %v1111_v50 }
 0x30a   :  { %1597 = vst [vmem:[%s2258_s5 + $0x18] sm:$0xff] %v1533_v43  }
 0x30b   :  { %1596 = vst [vmem:[%s2258_s5 + $0x10] sm:$0xff] %v1528_v45  }
 0x315   :  { %v1844_v46 = vpop.f32.mrb[40].mxu0 }
 0x316   :  { %v1127_v47 = vpop.f32.mrb[41].mxu0 }
 0x317   :  { %v1845_v48 = vpop.f32.mrb[42].mxu0 }
 0x318   :  { %v1543_v49 = vpack.c.bf16 %v1845_v48, %v1844_v46  ;;  %v1130_v51 = vpop.f32.mrb[43].mxu0 }
 0x319   :  { %v1538_v52 = vpack.c.bf16 %v1130_v51, %v1127_v47 }
 0x31a   :  { %1599 = vst [vmem:[%s2258_s5 + $0x28] sm:$0xff] %v1543_v49  }
 0x31b   :  { %1598 = vst [vmem:[%s2258_s5 + $0x20] sm:$0xff] %v1538_v52  }
 0x325   :  { %v1848_v53 = vpop.f32.mrb[44].mxu0 }
 0x326   :  { %v1143_v54 = vpop.f32.mrb[45].mxu0 }
 0x327   :  { %v1849_v55 = vpop.f32.mrb[46].mxu0 }
 0x328   :  { %v1553_v56 = vpack.c.bf16 %v1849_v55, %v1848_v53  ;;  %v1146_v57 = vpop.f32.mrb[47].mxu0 }
 0x329   :  { %v1548_v58 = vpack.c.bf16 %v1146_v57, %v1143_v54 }
 0x32a   :  { %1601 = vst [vmem:[%s2258_s5 + $0x38] sm:$0xff] %v1553_v56  }
 0x32b   :  { %1600 = vst [vmem:[%s2258_s5 + $0x30] sm:$0xff] %v1548_v58  }
 0x335   :  { %v1852_v59 = vpop.f32.mrb[48].mxu0 }
 0x336   :  { %v1159_v60 = vpop.f32.mrb[49].mxu0 }
 0x337   :  { %v1853_v61 = vpop.f32.mrb[50].mxu0 }
 0x338   :  { %v1563_v62 = vpack.c.bf16 %v1853_v61, %v1852_v59  ;;  %v1162_v63 = vpop.f32.mrb[51].mxu0 }
 0x339   :  { %v1558_v0 = vpack.c.bf16 %v1162_v63, %v1159_v60 }
 0x33a   :  { %1603 = vst [vmem:[%s2258_s5 + $0x48] sm:$0xff] %v1563_v62  }
 0x33b   :  { %1602 = vst [vmem:[%s2258_s5 + $0x40] sm:$0xff] %v1558_v0  }
 0x345   :  { %v1856_v1 = vpop.f32.mrb[52].mxu0 }
 0x346   :  { %v1175_v2 = vpop.f32.mrb[53].mxu0 }
 0x347   :  { %v1857_v3 = vpop.f32.mrb[54].mxu0 }
 0x348   :  { %v1573_v4 = vpack.c.bf16 %v1857_v3, %v1856_v1  ;;  %v1178_v5 = vpop.f32.mrb[55].mxu0 }
 0x349   :  { %v1568_v6 = vpack.c.bf16 %v1178_v5, %v1175_v2 }
 0x34a   :  { %1605 = vst [vmem:[%s2258_s5 + $0x58] sm:$0xff] %v1573_v4  }
 0x34b   :  { %1604 = vst [vmem:[%s2258_s5 + $0x50] sm:$0xff] %v1568_v6  }
 0x355   :  { %v1860_v7 = vpop.f32.mrb[56].mxu0 }
 0x356   :  { %v1191_v8 = vpop.f32.mrb[57].mxu0 }
 0x357   :  { %v1861_v9 = vpop.f32.mrb[58].mxu0 }
 0x358   :  { %v1583_v10 = vpack.c.bf16 %v1861_v9, %v1860_v7  ;;  %v1194_v11 = vpop.f32.mrb[59].mxu0 }
 0x359   :  { %v1578_v12 = vpack.c.bf16 %v1194_v11, %v1191_v8 }
 0x35a   :  { %1607 = vst [vmem:[%s2258_s5 + $0x68] sm:$0xff] %v1583_v10  }
 0x35b   :  { %1606 = vst [vmem:[%s2258_s5 + $0x60] sm:$0xff] %v1578_v12  }
 0x365   :  { %v1864_v13 = vpop.f32.mrb[60].mxu0 }
 0x366   :  { %v1207_v14 = vpop.f32.mrb[61].mxu0 }
 0x367   :  { %v1865_v15 = vpop.f32.mrb[62].mxu0 }
 0x368   :  { %v1593_v16 = vpack.c.bf16 %v1865_v15, %v1864_v13  ;;  %v1210_v17 = vpop.f32.mrb[63].mxu0 }
 0x369   :  { %v1588_v18 = vpack.c.bf16 %v1210_v17, %v1207_v14 }
 0x36a   :  { %1609 = vst [vmem:[%s2258_s5 + $0x78] sm:$0xff] %v1593_v16  }
 0x36b   :  { %1608 = vst [vmem:[%s2258_s5 + $0x70] sm:$0xff] %v1588_v18  }

</bundles_post_ra>
